<compile_context>
chip_gen: v7x
topology: tpu7x:2x2x1
jax: 0.10.0
libtpu: 0.0.40
codegen_flags: <defaults>
</compile_context>

<pallas_src>
import jax
import jax.numpy as jnp
from jax.experimental import pallas as pl
from jax.experimental.pallas import tpu as pltpu


def _round_up(x, m):
    return ((x + m - 1) // m) * m


# ----------------------------- Pallas kernel -------------------------------------

def _narre_net_kernel(rev_ref, uiid_ref,
                      wc_ref, bc_ref,
                      wmix_ref, bmix_ref,
                      watt_ref,
                      wfc_ref, bfc_ref,
                      out_ref):
    """NARRE sub-net forward for a tile of B samples.

    rev_ref : (B, r_num, r_len, wd_pad)  bf16 word embeddings of the reviews
    uiid_ref: (B, r_num, E_pad)          f32  u_i_id embeddings
    out_ref : (B, E_pad)                 f32  fc_layer(r_fea)   (lane-dense)
    """
    B, r_num, r_len, wd_pad = rev_ref.shape
    k, _, F_pad = wc_ref.shape
    E_pad = uiid_ref.shape[-1]
    L = r_len - k + 1
    R = B * r_num

    # ---- Conv2d(1, F, (k, wd)) + ReLU + max-pool over tokens --------------------
    # One big MXU matmul per tap over the full token axis; shifted accumulation
    # happens on the F-wide output, not the wd-wide input.
    rev2d = rev_ref[...].reshape(R * r_len, wd_pad)                 # bf16
    s = None
    for j in range(k):
        p = jnp.dot(rev2d, wc_ref[j],
                    preferred_element_type=jnp.float32)             # (R*r_len, F_pad)
        p = p.reshape(R, r_len, F_pad)[:, j:j + L, :]               # (R, L, F_pad)
        s = p if s is None else s + p
    # Bias + ReLU hoisted past the max-pool (exact).
    fea = jnp.maximum(jnp.max(s, axis=1) + bc_ref[...], 0.0)        # (R, F_pad)

    # ---- rs_mix = relu(review_linear(fea) + id_linear(relu(u_i_id_emb))) --------
    # Fused into a single matmul against the pre-concatenated [wrev; wid] weight.
    uiid = jnp.maximum(uiid_ref[...].reshape(R, E_pad), 0.0)
    x = jnp.concatenate([fea, uiid], axis=-1)                       # (R, F_pad+E_pad)
    rs = jnp.maximum(
        jnp.dot(x, wmix_ref[...], preferred_element_type=jnp.float32)
        + bmix_ref[...], 0.0)                                       # (R, E_pad)

    # ---- attention over the review axis (torch softmax dim=1) -------------------
    # N=1 matmul replaced with a VPU multiply + lane reduction; the attention bias
    # is constant over the review axis, so it cancels in the softmax.
    rs3 = rs.reshape(B, r_num, E_pad)
    att = jnp.sum(rs3 * watt_ref[...], axis=-1, keepdims=True)      # (B, r_num, 1)
    att = att - jnp.max(att, axis=1, keepdims=True)
    e = jnp.exp(att)
    att_w = e / jnp.sum(e, axis=1, keepdims=True)                   # (B, r_num, 1)

    fea3 = fea.reshape(B, r_num, F_pad)
    r_fea = jnp.sum(fea3 * att_w, axis=1)                           # (B, F_pad)
    # TODO(synk): nn.Dropout skipped (inference / identity behaviour).

    out_ref[...] = (jnp.dot(r_fea, wfc_ref[...],
                            preferred_element_type=jnp.float32)
                    + bfc_ref[...])                                 # (B, E_pad)


# ----------------------------- Wrapper --------------------------------------------

def _pick_b_tile(bs, per_sample_bytes, fixed_bytes, budget_bytes=16 << 20):
    """Largest divisor of bs whose tile fits a conservative VMEM budget.

    Budget is conservative (16 MiB) so the same tile table also fits v7x's
    smaller VMEM.  Prefers tiles whose output block is sublane-aligned
    (multiple of 8 or the full batch)."""
    fits = [d for d in range(1, bs + 1)
            if bs % d == 0 and fixed_bytes + d * per_sample_bytes <= budget_bytes]
    if not fits:
        return 1
    aligned = [d for d in fits if d == bs or d % 8 == 0]
    return max(aligned) if aligned else max(fits)


def narre_net_forward(rev_emb, uiid_emb, id_emb, params, kernel_size):
    """One NARRE sub-net (user or item) forward.

    rev_emb : (bs, r_num, r_len, wd) float32
    uiid_emb: (bs, r_num, E)        float32
    id_emb  : (bs, E)               float32
    returns : (bs, 2, E)            float32
    """
    bs, r_num, r_len, wd = rev_emb.shape
    E = id_emb.shape[-1]
    wc, bc, wrev, brev, wid, watt, batt, wfc, bfc = params
    k, _, F = wc.shape
    assert k == kernel_size

    wd_pad = _round_up(wd, 128)
    F_pad = _round_up(F, 128)
    E_pad = _round_up(E, 128)

    # Zero-padding contracted (K) / output (N) matmul dims is exact.
    rev_p = jnp.pad(rev_emb,
                    ((0, 0), (0, 0), (0, 0), (0, wd_pad - wd))).astype(jnp.bfloat16)
    uiid_p = jnp.pad(uiid_emb, ((0, 0), (0, 0), (0, E_pad - E)))
    wc_p = jnp.pad(wc, ((0, 0), (0, wd_pad - wd), (0, F_pad - F))).astype(jnp.bfloat16)
    bc_p = jnp.pad(bc, ((0, 0), (0, F_pad - F)))
    # Fuse review_linear (F,E) and id_linear (E,E) into one (F_pad+E_pad, E_pad) weight.
    wmix = jnp.concatenate([
        jnp.pad(wrev, ((0, F_pad - F), (0, E_pad - E))),
        jnp.pad(wid, ((0, E_pad - E), (0, E_pad - E))),
    ], axis=0)
    bmix = jnp.pad(brev, ((0, 0), (0, E_pad - E)))
    # Attention weight as a lane-major row; its bias cancels in the softmax.
    watt_row = jnp.pad(watt.reshape(1, E), ((0, 0), (0, E_pad - E)))
    del batt
    wfc_p = jnp.pad(wfc, ((0, F_pad - F), (0, E_pad - E)))
    bfc_p = jnp.pad(bfc, ((0, 0), (0, E_pad - E)))

    # VMEM-budgeted batch tile.
    per_sample = (r_num * r_len * wd_pad * 2 * 2        # rev block (bf16, double-buffered)
                  + r_num * E_pad * 4 * 2               # uiid block
                  + E_pad * 4 * 2                       # out block
                  + r_num * r_len * F_pad * 4 * 3)      # conv activations (p + s + slack)
    fixed = 2 * (k * wd_pad * F_pad * 2
                 + (F_pad + E_pad) * E_pad * 4
                 + F_pad * E_pad * 4
                 + 4 * E_pad * 4)
    b_tile = _pick_b_tile(bs, per_sample, fixed)
    grid = (bs // b_tile,)

    const2 = lambda b: (0, 0)
    const3 = lambda b: (0, 0, 0)

    out = pl.pallas_call(
        _narre_net_kernel,
        out_shape=jax.ShapeDtypeStruct((bs, E_pad), jnp.float32),
        grid_spec=pl.GridSpec(
            grid=grid,
            in_specs=[
                pl.BlockSpec((b_tile, r_num, r_len, wd_pad), lambda b: (b, 0, 0, 0)),
                pl.BlockSpec((b_tile, r_num, E_pad), lambda b: (b, 0, 0)),
                pl.BlockSpec((k, wd_pad, F_pad), const3),        # conv weight (bf16)
                pl.BlockSpec((1, F_pad), const2),                # conv bias
                pl.BlockSpec((F_pad + E_pad, E_pad), const2),    # fused [wrev; wid]
                pl.BlockSpec((1, E_pad), const2),                # review_linear bias
                pl.BlockSpec((1, E_pad), const2),                # attention weight row
                pl.BlockSpec((F_pad, E_pad), const2),            # fc weight
                pl.BlockSpec((1, E_pad), const2),                # fc bias
            ],
            out_specs=pl.BlockSpec((b_tile, E_pad), lambda b: (b, 0)),
        ),
        compiler_params=pltpu.CompilerParams(
            dimension_semantics=("parallel",)),
    )(rev_p, uiid_p, wc_p, bc_p, wmix, bmix, watt_row, wfc_p, bfc_p)

    # Stack with the id embedding in plain JAX (kernel output stays lane-dense).
    return jnp.stack([id_emb, out[:, :E]], axis=1)    # (bs, 2, E)


# ----------------------------- Parameter setup (glue) ----------------------------

def make_net_params(key, vocab_size, word_dim, id_num, ui_id_num,
                    id_emb_size, filters_num, kernel_size):
    ks = jax.random.split(key, 12)
    u = lambda k, shape, lo=-0.1, hi=0.1: jax.random.uniform(
        k, shape, jnp.float32, lo, hi)
    params = dict(
        word_embs=u(ks[0], (vocab_size, word_dim), -0.05, 0.05),       # xavier-ish
        id_embedding=u(ks[1], (id_num, id_emb_size)),
        u_i_id_embedding=u(ks[2], (ui_id_num, id_emb_size)),
        cnn_w=u(ks[3], (kernel_size, word_dim, filters_num), -0.05, 0.05),
        cnn_b=jnp.full((1, filters_num), 0.1, jnp.float32),
        review_w=u(ks[4], (filters_num, id_emb_size)),                 # stored transposed
        review_b=jnp.full((1, id_emb_size), 0.1, jnp.float32),
        id_w=u(ks[5], (id_emb_size, id_emb_size)),                     # transposed, no bias
        att_w=u(ks[6], (id_emb_size, 1)),                              # transposed
        att_b=jnp.full((1, 1), 0.1, jnp.float32),                      # cancels in softmax
        fc_w=u(ks[7], (filters_num, id_emb_size)),                     # transposed
        fc_b=jnp.full((1, id_emb_size), 0.1, jnp.float32),
    )
    return params


def run_net(reviews, ids, ids_list, p, kernel_size):
    # Embedding gathers are glue (plain JAX); heavy compute lives in the Pallas kernel.
    rev_emb = p["word_embs"][reviews]                  # (bs, r_num, r_len, wd)
    id_emb = p["id_embedding"][ids]                    # (bs, E)
    uiid_emb = p["u_i_id_embedding"][ids_list]         # (bs, r_num, E)
    conv_params = (p["cnn_w"], p["cnn_b"], p["review_w"], p["review_b"],
                   p["id_w"], p["att_w"], p["att_b"], p["fc_w"], p["fc_b"])
    return narre_net_forward(rev_emb, uiid_emb, id_emb, conv_params, kernel_size)


def narre_forward(datas, user_params, item_params, kernel_size):
    (user_reviews, item_reviews, uids, iids,
     user_item2id, item_user2id) = datas
    u_fea = run_net(user_reviews, uids, user_item2id, user_params, kernel_size)
    i_fea = run_net(item_reviews, iids, item_user2id, item_params, kernel_size)
    return u_fea, i_fea


# ----------------------------- Demo ----------------------------------------------

if __name__ == "__main__":
    # Small config (stand-in for `opt`).
    user_num, item_num = 10, 12
    vocab_size, word_dim = 50, 32
    id_emb_size, filters_num, kernel_size = 8, 16, 3
    bs, r_num, r_len = 2, 8, 16

    key = jax.random.PRNGKey(0)
    k_up, k_ip, k_d = jax.random.split(key, 3)

    user_params = make_net_params(k_up, vocab_size, word_dim, user_num, item_num,
                                  id_emb_size, filters_num, kernel_size)
    item_params = make_net_params(k_ip, vocab_size, word_dim, item_num, user_num,
                                  id_emb_size, filters_num, kernel_size)

    kd = jax.random.split(k_d, 6)
    user_reviews = jax.random.randint(kd[0], (bs, r_num, r_len), 0, vocab_size)
    item_reviews = jax.random.randint(kd[1], (bs, r_num, r_len), 0, vocab_size)
    uids = jax.random.randint(kd[2], (bs,), 0, user_num)
    iids = jax.random.randint(kd[3], (bs,), 0, item_num)
    user_item2id = jax.random.randint(kd[4], (bs, r_num), 0, item_num)
    item_user2id = jax.random.randint(kd[5], (bs, r_num), 0, user_num)

    datas = (user_reviews, item_reviews, uids, iids, user_item2id, item_user2id)

    u_fea, i_fea = narre_forward(datas, user_params, item_params, kernel_size)
    jax.block_until_ready((u_fea, i_fea))

    assert u_fea.shape == (bs, 2, id_emb_size)
    assert i_fea.shape == (bs, 2, id_emb_size)
    print("KERNEL_OK")
</pallas_src>

<mosaic_0001>
module attributes {stable_mosaic.version = 11 : i64} {
  func.func @_narre_net_kernel(%arg0: i32, %arg1: memref<2x8x16x128xbf16, #tpu.memory_space<vmem>>, %arg2: memref<2x8x128xf32, #tpu.memory_space<vmem>>, %arg3: memref<3x128x128xbf16, #tpu.memory_space<vmem>>, %arg4: memref<1x128xf32, #tpu.memory_space<vmem>>, %arg5: memref<256x128xf32, #tpu.memory_space<vmem>>, %arg6: memref<1x128xf32, #tpu.memory_space<vmem>>, %arg7: memref<1x128xf32, #tpu.memory_space<vmem>>, %arg8: memref<128x128xf32, #tpu.memory_space<vmem>>, %arg9: memref<1x128xf32, #tpu.memory_space<vmem>>, %arg10: memref<2x128xf32, #tpu.memory_space<vmem>>) attributes {dimension_semantics = [#tpu.dimension_semantics<parallel>], iteration_bounds = array<i64: 1>, scalar_prefetch = 0 : i64, scratch_operands = 0 : i64, tpu.core_type = #tpu.core_type<tc>, window_params = [{transform_indices = @transform_0, window_bounds = array<i64: 2, 8, 16, 128>}, {transform_indices = @transform_1, window_bounds = array<i64: 2, 8, 128>}, {pipeline_mode = #tpu.pipeline_mode<synchronous>, transform_indices = @transform_2, window_bounds = array<i64: 3, 128, 128>}, {pipeline_mode = #tpu.pipeline_mode<synchronous>, transform_indices = @transform_3, window_bounds = array<i64: 1, 128>}, {pipeline_mode = #tpu.pipeline_mode<synchronous>, transform_indices = @transform_4, window_bounds = array<i64: 256, 128>}, {pipeline_mode = #tpu.pipeline_mode<synchronous>, transform_indices = @transform_5, window_bounds = array<i64: 1, 128>}, {pipeline_mode = #tpu.pipeline_mode<synchronous>, transform_indices = @transform_6, window_bounds = array<i64: 1, 128>}, {pipeline_mode = #tpu.pipeline_mode<synchronous>, transform_indices = @transform_7, window_bounds = array<i64: 128, 128>}, {pipeline_mode = #tpu.pipeline_mode<synchronous>, transform_indices = @transform_8, window_bounds = array<i64: 1, 128>}, {transform_indices = @transform_9, window_bounds = array<i64: 2, 128>}]} {
    %c0 = arith.constant 0 : index
    %c0_0 = arith.constant 0 : index
    %c0_1 = arith.constant 0 : index
    %c0_2 = arith.constant 0 : index
    %0 = vector.load %arg1[%c0, %c0_0, %c0_1, %c0_2] : memref<2x8x16x128xbf16, #tpu.memory_space<vmem>>, vector<2x8x16x128xbf16>
    %1 = vector.shape_cast %0 : vector<2x8x16x128xbf16> to vector<256x128xbf16>
    %c0_3 = arith.constant 0 : index
    %c0_4 = arith.constant 0 : index
    %c0_5 = arith.constant 0 : index
    %2 = vector.load %arg3[%c0_3, %c0_4, %c0_5] : memref<3x128x128xbf16, #tpu.memory_space<vmem>>, vector<1x128x128xbf16>
    %3 = vector.shape_cast %2 : vector<1x128x128xbf16> to vector<128x128xbf16>
    %cst = arith.constant dense<0.000000e+00> : vector<256x128xf32>
    %4 = tpu.matmul %1, %3, %cst {dimension_numbers = #tpu.dot_dimension_numbers<[1], [0], [0], [1], [0, 0, 1, 1], [], []>} : vector<256x128xbf16>, vector<128x128xbf16>, vector<256x128xf32> -> vector<256x128xf32>
    %5 = vector.shape_cast %4 : vector<256x128xf32> to vector<16x16x128xf32>
    %6 = vector.extract_strided_slice %5 {offsets = [0, 0, 0], sizes = [16, 14, 128], strides = [1, 1, 1]} : vector<16x16x128xf32> to vector<16x14x128xf32>
    %c1 = arith.constant 1 : index
    %c0_6 = arith.constant 0 : index
    %c0_7 = arith.constant 0 : index
    %7 = vector.load %arg3[%c1, %c0_6, %c0_7] : memref<3x128x128xbf16, #tpu.memory_space<vmem>>, vector<1x128x128xbf16>
    %8 = vector.shape_cast %7 : vector<1x128x128xbf16> to vector<128x128xbf16>
    %cst_8 = arith.constant dense<0.000000e+00> : vector<256x128xf32>
    %9 = tpu.matmul %1, %8, %cst_8 {dimension_numbers = #tpu.dot_dimension_numbers<[1], [0], [0], [1], [0, 0, 1, 1], [], []>} : vector<256x128xbf16>, vector<128x128xbf16>, vector<256x128xf32> -> vector<256x128xf32>
    %10 = vector.shape_cast %9 : vector<256x128xf32> to vector<16x16x128xf32>
    %11 = vector.extract_strided_slice %10 {offsets = [0, 1, 0], sizes = [16, 14, 128], strides = [1, 1, 1]} : vector<16x16x128xf32> to vector<16x14x128xf32>
    %12 = arith.addf %6, %11 : vector<16x14x128xf32>
    %c2 = arith.constant 2 : index
    %c0_9 = arith.constant 0 : index
    %c0_10 = arith.constant 0 : index
    %13 = vector.load %arg3[%c2, %c0_9, %c0_10] : memref<3x128x128xbf16, #tpu.memory_space<vmem>>, vector<1x128x128xbf16>
    %14 = vector.shape_cast %13 : vector<1x128x128xbf16> to vector<128x128xbf16>
    %cst_11 = arith.constant dense<0.000000e+00> : vector<256x128xf32>
    %15 = tpu.matmul %1, %14, %cst_11 {dimension_numbers = #tpu.dot_dimension_numbers<[1], [0], [0], [1], [0, 0, 1, 1], [], []>} : vector<256x128xbf16>, vector<128x128xbf16>, vector<256x128xf32> -> vector<256x128xf32>
    %16 = vector.shape_cast %15 : vector<256x128xf32> to vector<16x16x128xf32>
    %17 = vector.extract_strided_slice %16 {offsets = [0, 2, 0], sizes = [16, 14, 128], strides = [1, 1, 1]} : vector<16x16x128xf32> to vector<16x14x128xf32>
    %18 = arith.addf %12, %17 : vector<16x14x128xf32>
    %cst_12 = arith.constant dense<0xFF800000> : vector<16x128xf32>
    %19 = vector.multi_reduction <maximumf>, %18, %cst_12 [1] : vector<16x14x128xf32> to vector<16x128xf32>
    %c0_13 = arith.constant 0 : index
    %c0_14 = arith.constant 0 : index
    %20 = vector.load %arg4[%c0_13, %c0_14] : memref<1x128xf32, #tpu.memory_space<vmem>>, vector<1x128xf32>
    %21 = vector.broadcast %20 : vector<1x128xf32> to vector<16x128xf32>
    %22 = arith.addf %19, %21 : vector<16x128xf32>
    %cst_15 = arith.constant 0.000000e+00 : f32
    %23 = vector.broadcast %cst_15 : f32 to vector<16x128xf32>
    %24 = arith.maximumf %22, %23 : vector<16x128xf32>
    %c0_16 = arith.constant 0 : index
    %c0_17 = arith.constant 0 : index
    %c0_18 = arith.constant 0 : index
    %25 = vector.load %arg2[%c0_16, %c0_17, %c0_18] : memref<2x8x128xf32, #tpu.memory_space<vmem>>, vector<2x8x128xf32>
    %26 = vector.shape_cast %25 : vector<2x8x128xf32> to vector<16x128xf32>
    %cst_19 = arith.constant 0.000000e+00 : f32
    %27 = vector.broadcast %cst_19 : f32 to vector<16x128xf32>
    %28 = arith.maximumf %26, %27 : vector<16x128xf32>
    %29 = tpu.concatenate %24, %28 in 1 : vector<16x128xf32>, vector<16x128xf32> -> vector<16x256xf32>
    %c0_20 = arith.constant 0 : index
    %c0_21 = arith.constant 0 : index
    %30 = vector.load %arg5[%c0_20, %c0_21] : memref<256x128xf32, #tpu.memory_space<vmem>>, vector<256x128xf32>
    %cst_22 = arith.constant dense<0.000000e+00> : vector<16x128xf32>
    %31 = tpu.matmul %29, %30, %cst_22 {dimension_numbers = #tpu.dot_dimension_numbers<[1], [0], [0], [1], [0, 0, 1, 1], [], []>} : vector<16x256xf32>, vector<256x128xf32>, vector<16x128xf32> -> vector<16x128xf32>
    %c0_23 = arith.constant 0 : index
    %c0_24 = arith.constant 0 : index
    %32 = vector.load %arg6[%c0_23, %c0_24] : memref<1x128xf32, #tpu.memory_space<vmem>>, vector<1x128xf32>
    %33 = vector.broadcast %32 : vector<1x128xf32> to vector<16x128xf32>
    %34 = arith.addf %31, %33 : vector<16x128xf32>
    %cst_25 = arith.constant 0.000000e+00 : f32
    %35 = vector.broadcast %cst_25 : f32 to vector<16x128xf32>
    %36 = arith.maximumf %34, %35 : vector<16x128xf32>
    %37 = vector.shape_cast %36 : vector<16x128xf32> to vector<2x8x128xf32>
    %c0_26 = arith.constant 0 : index
    %c0_27 = arith.constant 0 : index
    %38 = vector.load %arg7[%c0_26, %c0_27] : memref<1x128xf32, #tpu.memory_space<vmem>>, vector<1x128xf32>
    %39 = vector.shape_cast %38 : vector<1x128xf32> to vector<1x1x128xf32>
    %40 = vector.broadcast %39 : vector<1x1x128xf32> to vector<2x8x128xf32>
    %41 = arith.mulf %37, %40 : vector<2x8x128xf32>
    %cst_28 = arith.constant dense<0.000000e+00> : vector<2x8xf32>
    %42 = vector.multi_reduction <add>, %41, %cst_28 [2] : vector<2x8x128xf32> to vector<2x8xf32>
    %43 = vector.shape_cast %42 : vector<2x8xf32> to vector<2x8x1xf32>
    %cst_29 = arith.constant dense<0xFF800000> : vector<2x1xf32>
    %44 = vector.multi_reduction <maximumf>, %43, %cst_29 [1] : vector<2x8x1xf32> to vector<2x1xf32>
    %45 = vector.shape_cast %44 : vector<2x1xf32> to vector<2x1x1xf32>
    %46 = vector.broadcast %45 : vector<2x1x1xf32> to vector<2x8x1xf32>
    %47 = arith.subf %43, %46 : vector<2x8x1xf32>
    %48 = math.exp %47 : vector<2x8x1xf32>
    %cst_30 = arith.constant dense<0.000000e+00> : vector<2x1xf32>
    %49 = vector.multi_reduction <add>, %48, %cst_30 [1] : vector<2x8x1xf32> to vector<2x1xf32>
    %50 = vector.shape_cast %49 : vector<2x1xf32> to vector<2x1x1xf32>
    %51 = vector.broadcast %50 : vector<2x1x1xf32> to vector<2x8x1xf32>
    %52 = arith.divf %48, %51 : vector<2x8x1xf32>
    %53 = vector.shape_cast %24 : vector<16x128xf32> to vector<2x8x128xf32>
    %54 = vector.broadcast %52 : vector<2x8x1xf32> to vector<2x8x128xf32>
    %55 = arith.mulf %53, %54 : vector<2x8x128xf32>
    %cst_31 = arith.constant dense<0.000000e+00> : vector<2x128xf32>
    %56 = vector.multi_reduction <add>, %55, %cst_31 [1] : vector<2x8x128xf32> to vector<2x128xf32>
    %c0_32 = arith.constant 0 : index
    %c0_33 = arith.constant 0 : index
    %57 = vector.load %arg8[%c0_32, %c0_33] : memref<128x128xf32, #tpu.memory_space<vmem>>, vector<128x128xf32>
    %cst_34 = arith.constant dense<0.000000e+00> : vector<2x128xf32>
    %58 = tpu.matmul %56, %57, %cst_34 {dimension_numbers = #tpu.dot_dimension_numbers<[1], [0], [0], [1], [0, 0, 1, 1], [], []>} : vector<2x128xf32>, vector<128x128xf32>, vector<2x128xf32> -> vector<2x128xf32>
    %c0_35 = arith.constant 0 : index
    %c0_36 = arith.constant 0 : index
    %59 = vector.load %arg9[%c0_35, %c0_36] : memref<1x128xf32, #tpu.memory_space<vmem>>, vector<1x128xf32>
    %60 = vector.broadcast %59 : vector<1x128xf32> to vector<2x128xf32>
    %61 = arith.addf %58, %60 : vector<2x128xf32>
    %c0_37 = arith.constant 0 : index
    %c0_38 = arith.constant 0 : index
    %62 = vector.load %arg10[%c0_37, %c0_38] : memref<2x128xf32, #tpu.memory_space<vmem>>, vector<2x128xf32>
    tpu.vector_store %arg10[%c0_37, %c0_38], %61 {strides = array<i32>} : memref<2x128xf32, #tpu.memory_space<vmem>>, vector<2x128xf32>,
    return
  }
  func.func @transform_0(%arg0: i32) -> (i32, i32, i32, i32) {
    %c0_i32 = arith.constant 0 : i32
    %c0_i32_0 = arith.constant 0 : i32
    %c0_i32_1 = arith.constant 0 : i32
    %c0_i32_2 = arith.constant 0 : i32
    return %arg0, %c0_i32, %c0_i32_0, %c0_i32_1 : i32, i32, i32, i32
  }
  func.func @transform_1(%arg0: i32) -> (i32, i32, i32) {
    %c0_i32 = arith.constant 0 : i32
    %c0_i32_0 = arith.constant 0 : i32
    %c0_i32_1 = arith.constant 0 : i32
    return %arg0, %c0_i32, %c0_i32_0 : i32, i32, i32
  }
  func.func @transform_2(%arg0: i32) -> (i32, i32, i32) {
    %c0_i32 = arith.constant 0 : i32
    %c0_i32_0 = arith.constant 0 : i32
    %c0_i32_1 = arith.constant 0 : i32
    %c0_i32_2 = arith.constant 0 : i32
    return %c0_i32, %c0_i32_0, %c0_i32_1 : i32, i32, i32
  }
  func.func @transform_3(%arg0: i32) -> (i32, i32) {
    %c0_i32 = arith.constant 0 : i32
    %c0_i32_0 = arith.constant 0 : i32
    %c0_i32_1 = arith.constant 0 : i32
    return %c0_i32, %c0_i32_0 : i32, i32
  }
  func.func @transform_4(%arg0: i32) -> (i32, i32) {
    %c0_i32 = arith.constant 0 : i32
    %c0_i32_0 = arith.constant 0 : i32
    %c0_i32_1 = arith.constant 0 : i32
    return %c0_i32, %c0_i32_0 : i32, i32
  }
  func.func @transform_5(%arg0: i32) -> (i32, i32) {
    %c0_i32 = arith.constant 0 : i32
    %c0_i32_0 = arith.constant 0 : i32
    %c0_i32_1 = arith.constant 0 : i32
    return %c0_i32, %c0_i32_0 : i32, i32
  }
  func.func @transform_6(%arg0: i32) -> (i32, i32) {
    %c0_i32 = arith.constant 0 : i32
    %c0_i32_0 = arith.constant 0 : i32
    %c0_i32_1 = arith.constant 0 : i32
    return %c0_i32, %c0_i32_0 : i32, i32
  }
  func.func @transform_7(%arg0: i32) -> (i32, i32) {
    %c0_i32 = arith.constant 0 : i32
    %c0_i32_0 = arith.constant 0 : i32
    %c0_i32_1 = arith.constant 0 : i32
    return %c0_i32, %c0_i32_0 : i32, i32
  }
  func.func @transform_8(%arg0: i32) -> (i32, i32) {
    %c0_i32 = arith.constant 0 : i32
    %c0_i32_0 = arith.constant 0 : i32
    %c0_i32_1 = arith.constant 0 : i32
    return %c0_i32, %c0_i32_0 : i32, i32
  }
  func.func @transform_9(%arg0: i32) -> (i32, i32) {
    %c0_i32 = arith.constant 0 : i32
    %c0_i32_0 = arith.constant 0 : i32
    return %arg0, %c0_i32 : i32, i32
  }
}

</mosaic_0001>

<bundles_post_ra>
// kernel: tpu_custom_call.1
= control target key start
LH: loop header
LB: loop body
LE: loop exit
PB: predicated region body
PF: predicated region fallthrough
CT: control target
= control target key end

     0   :  { %14 = vsyncpa [#allocation3], 0  ;;  %s2887_s0 = inlined_call_operand.hbm [shape: bf16[2,8,16,128], index: 0, kind: input, shape index: {}]   ;;  %s2888_s1 = inlined_call_operand.hbm [shape: f32[2,8,128], index: 1, kind: input, shape index: {}]   ;;  %s2889_s2 = inlined_call_operand.hbm [shape: bf16[3,128,128], index: 2, kind: input, shape index: {}]   ;;  %s2890_s3 = inlined_call_operand.vmem [shape: f32[1,128], index: 3, kind: input, shape index: {}]   ;;  %s2891_s4 = inlined_call_operand.hbm [shape: f32[256,128], index: 4, kind: input, shape index: {}]   ;;  %s2892_s5 = inlined_call_operand.vmem [shape: f32[1,128], index: 5, kind: input, shape index: {}]   ;;  %s2893_s6 = inlined_call_operand.vmem [shape: f32[1,128], index: 6, kind: input, shape index: {}]   ;;  %s2894_s7 = inlined_call_operand.hbm [shape: f32[128,128], index: 7, kind: input, shape index: {}]   ;;  %s2895_s8 = inlined_call_operand.vmem [shape: f32[1,128], index: 8, kind: input, shape index: {}]   ;;  %s2896_s9 = inlined_call_operand.hbm [shape: f32[2,128], index: 9, kind: output, shape index: {}]  }
   0x1   :  { %15 = vsyncpa [#allocation6], 0 }
   0x2   :  { %16 = vsyncpa [#allocation9], 0 }
   0x3   :  { %17 = vsyncpa [#allocation4], 0  ;;  %s2413_s30 = smov [#allocation5]   ;;  %s2273_s13 = scalar_lea.hbm %s2888_s1, 256 }
   0x4   :  { %s35_s10 = sshll.u32 %s2413_s30, 4  ;;  %p2274_p0 = scmp.ne.s32.totalorder %s2888_s1, %s2273_s13  ;;  %s36_s10 = int_to_ptr.vmem [resolvable:$true] %s35_s10 }
   0x5   :  { %p2277_p1 = scmp.lt.u32.totalorder %s2273_s13, %s2888_s1 }
   0x7   :  { %p2279_p2 = pnand %p2277_p1, %p2274_p0 }
   0x9   :  { %2282 = shalt.err (!%p2279_p2)
}
   0xa   :  { %s2283_s18 = scalar_lea.vmem %s36_s10, 256  ;;  %p2288_p4 = scmp.lt.s32.totalorder %s36_s10, %s36_s10 }
   0xb   :  { %p2284_p3 = scmp.ne.s32.totalorder %s36_s10, %s2283_s18  ;;  %p2289_p5 = scmp.lt.s32.totalorder %s2283_s18, %s2283_s18 }
   0xd   :  { %p2290_p6 = por %p2289_p5, %p2288_p4 }
   0xf   :  { %p2291_p7 = pnand %p2290_p6, %p2284_p3 }
  0x11   :  { %2294 = shalt.err (!%p2291_p7)
}
  0x12   :  { %s2414_s19 = smov 128   ;;  %s2415_s20 = smov 8  }
  0x13   :  { %41 = dma.hbm_to_vmem [thread:$0]  %s2888_s1, 256, %s36_s10, [#allocation6], %s2414_s19, %s2414_s19, %s2415_s20  }
  0x14   :  { %s2416_s23 = smov [#allocation8]   ;;  %s2417_s25 = smov [#allocation2]  }
  0x15   :  { %s61_s24 = sshll.u32 %s2416_s23, 4  ;;  %s23_s26 = sshll.u32 %s2417_s25, 4  ;;  %s62_s24 = int_to_ptr.vmem [resolvable:$true] %s61_s24  ;;  %s24_s26 = int_to_ptr.vmem [resolvable:$true] %s23_s26 }
  0x16   :  { %s2295_s29 = scalar_lea.hbm %s2891_s4, 4096 }
  0x17   :  { %p2296_p8 = scmp.ne.s32.totalorder %s2891_s4, %s2295_s29  ;;  %p2299_p9 = scmp.lt.u32.totalorder %s2295_s29, %s2891_s4 }
  0x19   :  { %p2301_p10 = pnand %p2299_p9, %p2296_p8 }
  0x1b   :  { %2304 = shalt.err (!%p2301_p10)
}
  0x1c   :  { %s2305_s1 = scalar_lea.vmem %s62_s24, 4096  ;;  %p2310_p12 = scmp.lt.s32.totalorder %s62_s24, %s62_s24 }
  0x1d   :  { %p2306_p11 = scmp.ne.s32.totalorder %s62_s24, %s2305_s1  ;;  %p2311_p13 = scmp.lt.s32.totalorder %s2305_s1, %s2305_s1 }
  0x1f   :  { %p2312_p0 = por %p2311_p13, %p2310_p12 }
  0x21   :  { %p2313_p1 = pnand %p2312_p0, %p2306_p11 }
  0x23   :  { %2316 = shalt.err (!%p2313_p1)
}
  0x24   :  { %67 = dma.hbm_to_vmem [thread:$0]  %s2891_s4, 4096, %s62_s24, [#allocation9], %s2414_s19, %s2414_s19, %s2415_s20  }
  0x25   :  { %s2317_s17 = scalar_lea.hbm %s2887_s0, 2048 }
  0x26   :  { %p2318_p2 = scmp.ne.s32.totalorder %s2887_s0, %s2317_s17  ;;  %p2321_p3 = scmp.lt.u32.totalorder %s2317_s17, %s2887_s0 }
  0x28   :  { %p2323_p4 = pnand %p2321_p3, %p2318_p2 }
  0x2a   :  { %2326 = shalt.err (!%p2323_p4)
}
  0x2b   :  { %s2327_s25 = scalar_lea.vmem %s24_s26, 2048  ;;  %p2332_p6 = scmp.lt.s32.totalorder %s24_s26, %s24_s26 }
  0x2c   :  { %p2328_p5 = scmp.ne.s32.totalorder %s24_s26, %s2327_s25  ;;  %p2333_p7 = scmp.lt.s32.totalorder %s2327_s25, %s2327_s25 }
  0x2e   :  { %p2334_p8 = por %p2333_p7, %p2332_p6 }
  0x30   :  { %p2335_p9 = pnand %p2334_p8, %p2328_p5 }
  0x32   :  { %2338 = shalt.err (!%p2335_p9)
}
  0x33   :  { %s2418_s4 = smov 64   ;;  %s2419_s24 = smov 4  }
  0x34   :  { %29 = dma.hbm_to_vmem [thread:$0]  %s2887_s0, 2048, %s24_s26, [#allocation3], %s2418_s4, %s2418_s4, %s2419_s24  }
  0x35   :  { %s2420_s29 = smov [#allocation7]   ;;  %s2421_s11 = smov [#allocation10]  }
  0x36   :  { %s47_s30 = sshll.u32 %s2420_s29, 4  ;;  %s77_s12 = sshll.u32 %s2421_s11, 4  ;;  %s48_s30 = int_to_ptr.vmem [resolvable:$true] %s47_s30  ;;  %s78_s12 = int_to_ptr.vmem [resolvable:$true] %s77_s12 }
  0x37   :  { %s2339_s10 = scalar_lea.hbm %s2889_s2, 3072 }
  0x38   :  { %p2340_p10 = scmp.ne.s32.totalorder %s2889_s2, %s2339_s10  ;;  %p2343_p11 = scmp.lt.u32.totalorder %s2339_s10, %s2889_s2 }
  0x3a   :  { %p2345_p12 = pnand %p2343_p11, %p2340_p10 }
  0x3c   :  { %2348 = shalt.err (!%p2345_p12)
}
  0x3d   :  { %s2349_s0 = scalar_lea.vmem %s48_s30, 3072  ;;  %p2354_p0 = scmp.lt.s32.totalorder %s48_s30, %s48_s30 }
  0x3e   :  { %p2350_p13 = scmp.ne.s32.totalorder %s48_s30, %s2349_s0  ;;  %p2355_p1 = scmp.lt.s32.totalorder %s2349_s0, %s2349_s0 }
  0x40   :  { %p2356_p2 = por %p2355_p1, %p2354_p0 }
  0x42   :  { %p2357_p3 = pnand %p2356_p2, %p2350_p13 }
  0x44   :  { %2360 = shalt.err (!%p2357_p3)
}
  0x45   :  { %53 = dma.hbm_to_vmem [thread:$0]  %s2889_s2, 3072, %s48_s30, [#allocation6], %s2418_s4, %s2418_s4, %s2419_s24  }
  0x46   :  { %s2361_s23 = scalar_lea.hbm %s2894_s7, 2048 }
  0x47   :  { %p2362_p4 = scmp.ne.s32.totalorder %s2894_s7, %s2361_s23  ;;  %p2365_p5 = scmp.lt.u32.totalorder %s2361_s23, %s2894_s7 }
  0x49   :  { %p2367_p6 = pnand %p2365_p5, %p2362_p4 }
  0x4b   :  { %2370 = shalt.err (!%p2367_p6)
}
  0x4c   :  { %s2371_s11 = scalar_lea.vmem %s78_s12, 2048  ;;  %p2376_p8 = scmp.lt.s32.totalorder %s78_s12, %s78_s12 }
  0x4d   :  { %p2372_p7 = scmp.ne.s32.totalorder %s78_s12, %s2371_s11  ;;  %p2377_p9 = scmp.lt.s32.totalorder %s2371_s11, %s2371_s11 }
  0x4f   :  { %p2378_p10 = por %p2377_p9, %p2376_p8 }
  0x51   :  { %p2379_p11 = pnand %p2378_p10, %p2372_p7 }
  0x53   :  { %2382 = shalt.err (!%p2379_p11)
}
  0x54   :  { %83 = dma.hbm_to_vmem [thread:$0]  %s2894_s7, 2048, %s78_s12, [#allocation9], %s2414_s19, %s2414_s19, %s2415_s20  }
  0x55   :  { %2405 = dma.done.wait [#allocation3], 2048  }
  0x56   :  { %2406 = vsyncadd [#allocation3], 4294965248 }
  0x57   :  { %2407 = dma.done.wait [#allocation6], 3328  }
  0x58   :  { %2408 = vsyncadd [#allocation6], 4294963968 }
  0x59   :  { %2409 = dma.done.wait [#allocation9], 6144  }
  0x5a   :  { %2410 = vsyncadd [#allocation9], 4294961152  ;;  %v2225_v0 = vld [vmem:[#allocation7] sm:$0xff]   ;;  %v2227_v2 = vld [vmem:[#allocation7 + $0x8] sm:$0xff]   ;;  %vm713_vm0 = vcmask 1046528   ;;  %vm1084_vm1 = vcmask 1045504  }
  0x5b   :  { %v2226_v1 = vld [vmem:[#allocation7 + $0x40] sm:$0xff]   ;;  %1977 = vmatprep.subr.bf16.mxu0 %v2225_v0  ;;  %v2228_v3 = vld [vmem:[#allocation7 + $0x48] sm:$0xff]   ;;  %v2229_v4 = vld [vmem:[#allocation7 + $0x10] sm:$0xff]   ;;  %vm1385_vm2 = vcmask 1041409   ;;  %vm1388_vm3 = vcmask 1042434   ;;  %vm1391_vm4 = vcmask 1043459  }
  0x5c   :  { %2025 = vmatprep.subr.bf16.mxu1 %v2226_v1  ;;  %1978 = vmatpush3.bf16.msra.mxu0 %v2225_v0  ;;  %v2230_v5 = vld [vmem:[#allocation7 + $0x50] sm:$0xff]   ;;  %v2231_v6 = vld [vmem:[#allocation7 + $0x18] sm:$0xff]   ;;  %v2233_v8 = vld [vmem:[#allocation7 + $0x20] sm:$0xff]   ;;  %vm1394_vm5 = vcmask 1044484   ;;  %vm1397_vm6 = vcmask 1045509   ;;  %vm1400_vm7 = vcmask 1046534  }
  0x5d   :  { %2026 = vmatpush3.bf16.msra.mxu1 %v2226_v1  ;;  %1979 = vmatprep.subr.bf16.mxu0 %v2227_v2  ;;  %v2232_v7 = vld [vmem:[#allocation7 + $0x58] sm:$0xff]   ;;  %v2234_v9 = vld [vmem:[#allocation7 + $0x60] sm:$0xff]   ;;  %v2235_v10 = vld [vmem:[#allocation7 + $0x28] sm:$0xff]   ;;  %vm1403_vm8 = vcmask 1047559   ;;  %vm2423_vm9 = vmmov 0   ;;  %s2425_s12 = smov [#allocation11]  }
  0x5e   :  { %2027 = vmatprep.subr.bf16.mxu1 %v2228_v3  ;;  %v2545_v11 = vld [vmem:[#allocation2] sm:$0xff]   ;;  %v2236_v12 = vld [vmem:[#allocation7 + $0x68] sm:$0xff]   ;;  %v2239_v15 = vld [vmem:[#allocation7 + $0x38] sm:$0xff]   ;;  %s1795_s13 = sshll.u32 %s2425_s12, 4  ;;  %s1796_s13 = int_to_ptr.vmem [resolvable:$true] %s1795_s13 }
  0x5f   :  { %1993 = vmatprep.mubr.bf16.mxu0 %v2545_v11  ;;  %2041 = vmatprep.mubr.bf16.mxu1 %v2545_v11  ;;  %v2237_v13 = vld [vmem:[#allocation7 + $0x30] sm:$0xff]   ;;  %v2240_v16 = vld [vmem:[#allocation7 + $0x78] sm:$0xff]   ;;  %v2243_v17 = vld [vmem:[#allocation7 + $0x80] sm:$0xff]   ;;  %s2383_s1 = scalar_lea.vmem %s1796_s13, 32  ;;  %p2388_p13 = scmp.lt.s32.totalorder %s1796_s13, %s1796_s13 }
  0x60   :  { %1980 = vmatpush3.bf16.msra.mxu0 %v2227_v2  ;;  %v2238_v14 = vld [vmem:[#allocation7 + $0x70] sm:$0xff]   ;;  %v2549_v18 = vld [vmem:[#allocation2 + $0x8] sm:$0xff]   ;;  %v2551_v19 = vld [vmem:[#allocation2 + $0x10] sm:$0xff]   ;;  %p2384_p12 = scmp.ne.s32.totalorder %s1796_s13, %s2383_s1  ;;  %p2389_p0 = scmp.lt.s32.totalorder %s2383_s1, %s2383_s1 }
  0x61   :  { %2028 = vmatpush3.bf16.msra.mxu1 %v2228_v3  ;;  %1981 = vmatprep.subr.bf16.mxu0 %v2229_v4  ;;  %v2246_v20 = vld [vmem:[#allocation7 + $0x88] sm:$0xff]   ;;  %v2249_v21 = vld [vmem:[#allocation7 + $0x90] sm:$0xff]   ;;  %v2252_v24 = vld [vmem:[#allocation7 + $0x98] sm:$0xff]  }
  0x62   :  { %2029 = vmatprep.subr.bf16.mxu1 %v2230_v5  ;;  %v2245_v22 = vld [vmem:[#allocation2 + $0x18] sm:$0xff]   ;;  %v2247_v23 = vld [vmem:[#allocation2 + $0x20] sm:$0xff]   ;;  %v2255_v25 = vld [vmem:[#allocation7 + $0xa0] sm:$0xff]   ;;  %p2390_p1 = por %p2389_p0, %p2388_p13 }
  0x63   :  { %v2248_v26 = vld [vmem:[#allocation2 + $0x28] sm:$0xff]   ;;  %v2250_v27 = vld [vmem:[#allocation2 + $0x30] sm:$0xff]   ;;  %v2258_v28 = vld [vmem:[#allocation7 + $0xa8] sm:$0xff]  }
  0x64   :  { %1982 = vmatpush3.bf16.msra.mxu0 %v2229_v4  ;;  %v2261_v29 = vld [vmem:[#allocation7 + $0xb0] sm:$0xff]   ;;  %v2251_v30 = vld [vmem:[#allocation2 + $0x38] sm:$0xff]   ;;  %v2264_v32 = vld [vmem:[#allocation7 + $0xb8] sm:$0xff]   ;;  %p2391_p2 = pnand %p2390_p1, %p2384_p12 }
  0x65   :  { %2030 = vmatpush3.bf16.msra.mxu1 %v2230_v5  ;;  %1983 = vmatprep.subr.bf16.mxu0 %v2231_v6  ;;  %v2253_v31 = vld [vmem:[#allocation2 + $0x40] sm:$0xff]   ;;  %v2254_v33 = vld [vmem:[#allocation2 + $0x48] sm:$0xff]   ;;  %v2256_v34 = vld [vmem:[#allocation2 + $0x50] sm:$0xff]  }
  0x66   :  { %2031 = vmatprep.subr.bf16.mxu1 %v2232_v7  ;;  %v2257_v35 = vld [vmem:[#allocation2 + $0x58] sm:$0xff]   ;;  %v2259_v36 = vld [vmem:[#allocation2 + $0x60] sm:$0xff]   ;;  %v2260_v37 = vld [vmem:[#allocation2 + $0x68] sm:$0xff]  }
  0x67   :  { %v2262_v38 = vld [vmem:[#allocation2 + $0x70] sm:$0xff]   ;;  %v2263_v39 = vld [vmem:[#allocation2 + $0x78] sm:$0xff]   ;;  %v1439_v46 = vld [vmem:[#allocation8 + $0x90] sm:$0xff] }
  0x68   :  { %1984 = vmatpush3.bf16.msra.mxu0 %v2231_v6  ;;  %v1437_v40 = vld [vmem:[#allocation8 + $0x80] sm:$0xff]  ;;  %v1438_v41 = vld [vmem:[#allocation8 + $0x88] sm:$0xff]  ;;  %v1440_v47 = vld [vmem:[#allocation8 + $0x98] sm:$0xff] }
  0x69   :  { %2032 = vmatpush3.bf16.msra.mxu1 %v2232_v7  ;;  %1985 = vmatprep.subr.bf16.mxu0 %v2233_v8  ;;  %v2156_v42 = vpack.c.bf16 %v1438_v41, %v1437_v40  ;;  %v1421_v43 = vld [vmem:[#allocation8] sm:$0xff]  ;;  %v1422_v44 = vld [vmem:[#allocation8 + $0x8] sm:$0xff]  ;;  %v2160_v48 = vpack.c.bf16 %v1440_v47, %v1439_v46  ;;  %v1423_v49 = vld [vmem:[#allocation8 + $0x10] sm:$0xff] }
  0x6a   :  { %2033 = vmatprep.subr.bf16.mxu1 %v2234_v9  ;;  %v2158_v45 = vpack.c.bf16 %v1422_v44, %v1421_v43  ;;  %v1424_v50 = vld [vmem:[#allocation8 + $0x18] sm:$0xff]  ;;  %v1441_v52 = vld [vmem:[#allocation8 + $0xa0] sm:$0xff]  ;;  %v1442_v53 = vld [vmem:[#allocation8 + $0xa8] sm:$0xff] }
  0x6b   :  { %v2162_v51 = vpack.c.bf16 %v1424_v50, %v1423_v49  ;;  %v2164_v54 = vpack.c.bf16 %v1442_v53, %v1441_v52  ;;  %v1425_v55 = vld [vmem:[#allocation8 + $0x20] sm:$0xff]  ;;  %v1426_v56 = vld [vmem:[#allocation8 + $0x28] sm:$0xff]  ;;  %v1443_v58 = vld [vmem:[#allocation8 + $0xb0] sm:$0xff] }
  0x6c   :  { %1986 = vmatpush3.bf16.msra.mxu0 %v2233_v8  ;;  %v2166_v57 = vpack.c.bf16 %v1426_v56, %v1425_v55  ;;  %v1444_v59 = vld [vmem:[#allocation8 + $0xb8] sm:$0xff]  ;;  %v1427_v61 = vld [vmem:[#allocation8 + $0x30] sm:$0xff]  ;;  %v1445_v0 = vld [vmem:[#allocation8 + $0xc0] sm:$0xff] }
  0x6d   :  { %2034 = vmatpush3.bf16.msra.mxu1 %v2234_v9  ;;  %1987 = vmatprep.subr.bf16.mxu0 %v2235_v10  ;;  %v2168_v60 = vpack.c.bf16 %v1444_v59, %v1443_v58  ;;  %v1428_v62 = vld [vmem:[#allocation8 + $0x38] sm:$0xff]  ;;  %v1446_v1 = vld [vmem:[#allocation8 + $0xc8] sm:$0xff]  ;;  %v1429_v3 = vld [vmem:[#allocation8 + $0x40] sm:$0xff] }
  0x6e   :  { %2035 = vmatprep.subr.bf16.mxu1 %v2236_v12  ;;  %v2170_v63 = vpack.c.bf16 %v1428_v62, %v1427_v61  ;;  %v2172_v2 = vpack.c.bf16 %v1446_v1, %v1445_v0  ;;  %v1430_v4 = vld [vmem:[#allocation8 + $0x48] sm:$0xff]  ;;  %v1447_v6 = vld [vmem:[#allocation8 + $0xd0] sm:$0xff]  ;;  %v1448_v7 = vld [vmem:[#allocation8 + $0xd8] sm:$0xff] }
  0x6f   :  { %v2174_v5 = vpack.c.bf16 %v1430_v4, %v1429_v3  ;;  %v2176_v8 = vpack.c.bf16 %v1448_v7, %v1447_v6  ;;  %v1431_v9 = vld [vmem:[#allocation8 + $0x50] sm:$0xff] }
  0x70   :  { %1988 = vmatpush3.bf16.msra.mxu0 %v2235_v10  ;;  %v1432_v10 = vld [vmem:[#allocation8 + $0x58] sm:$0xff] }
  0x71   :  { %2036 = vmatpush3.bf16.msra.mxu1 %v2236_v12  ;;  %1989 = vmatprep.subr.bf16.mxu0 %v2237_v13  ;;  %v1449_v12 = vld [vmem:[#allocation8 + $0xe0] sm:$0xff] }
  0x72   :  { %2037 = vmatprep.subr.bf16.mxu1 %v2238_v14 }
  0x74   :  { %1990 = vmatpush3.bf16.msra.mxu0 %v2237_v13  ;;  %v1450_v13 = vld [vmem:[#allocation8 + $0xe8] sm:$0xff] }
  0x75   :  { %2038 = vmatpush3.bf16.msra.mxu1 %v2238_v14  ;;  %1991 = vmatprep.subr.bf16.mxu0 %v2239_v15  ;;  %v2180_v14 = vpack.c.bf16 %v1450_v13, %v1449_v12 }
  0x76   :  { %2039 = vmatprep.subr.bf16.mxu1 %v2240_v16 }
  0x78   :  { %1992 = vmatpush3.bf16.msra.mxu0 %v2239_v15  ;;  %v1433_v15 = vld [vmem:[#allocation8 + $0x60] sm:$0xff] }
  0x79   :  { %2040 = vmatpush3.bf16.msra.mxu1 %v2240_v16  ;;  %2073 = vmatprep.subr.bf16.mxu0 %v2243_v17  ;;  %v1434_v16 = vld [vmem:[#allocation8 + $0x68] sm:$0xff] }
  0x7a   :  { %2157 = vmatprep.subr.bf16.mxu1 %v2156_v42 }
  0x7b   :  { %1994 = vmatmul.mubr.bf16.vlgmr.msra.gmra.mrb[0].mxu0 %v2549_v18 }
  0x7c   :  { %2042 = vmatmul.mubr.bf16.vlgmr.msra.gmra.mrb[0].mxu1 %v2549_v18  ;;  %2074 = vmatpush3.bf16.msra.mxu0 %v2243_v17  ;;  %v2182_v17 = vpack.c.bf16 %v1434_v16, %v1433_v15 }
  0x7d   :  { %1997 = vmatprep.mubr.bf16.mxu0 %v2551_v19  ;;  %2045 = vmatprep.mubr.bf16.mxu1 %v2551_v19 }
  0x7e   :  { %2075 = vmatprep.subr.bf16.mxu0 %v2246_v20  ;;  %2159 = vmatpush3.bf16.msra.mxu1 %v2158_v45 }
  0x7f   :  { %2161 = vmatprep.subr.bf16.mxu1 %v2160_v48 }
  0x80   :  { %2076 = vmatpush3.bf16.msra.mxu0 %v2246_v20 }
  0x81   :  { %2077 = vmatprep.subr.bf16.mxu0 %v2249_v21 }
  0x82   :  { %2163 = vmatpush3.bf16.msra.mxu1 %v2162_v51 }
  0x83   :  { %1998 = vmatmul.mubr.bf16.gmra.mrb[4].mxu0 %v2245_v22  ;;  %2165 = vmatprep.subr.bf16.mxu1 %v2164_v54 }
  0x84   :  { %2046 = vmatmul.mubr.bf16.gmra.mrb[4].mxu1 %v2245_v22  ;;  %2001 = vmatprep.mubr.bf16.mxu0 %v2247_v23 }
  0x85   :  { %2049 = vmatprep.mubr.bf16.mxu1 %v2247_v23  ;;  %2078 = vmatpush3.bf16.msra.mxu0 %v2249_v21  ;;  %v1435_v21 = vld [vmem:[#allocation8 + $0x70] sm:$0xff] }
  0x86   :  { %2079 = vmatprep.subr.bf16.mxu0 %v2252_v24  ;;  %2167 = vmatpush3.bf16.msra.mxu1 %v2166_v57 }
  0x87   :  { %2169 = vmatprep.subr.bf16.mxu1 %v2168_v60 }
  0x89   :  { %2080 = vmatpush3.bf16.msra.mxu0 %v2252_v24  ;;  %v1364_v24 = vld [vmem:[#allocation5] sm:$0xff] }
  0x8a   :  { %2081 = vmatprep.subr.bf16.mxu0 %v2255_v25  ;;  %2171 = vmatpush3.bf16.msra.mxu1 %v2170_v63 }
  0x8b   :  { %2002 = vmatmul.mubr.bf16.gmra.mrb[8].mxu0 %v2248_v26  ;;  %2173 = vmatprep.subr.bf16.mxu1 %v2172_v2 }
  0x8c   :  { %2050 = vmatmul.mubr.bf16.gmra.mrb[8].mxu1 %v2248_v26  ;;  %2005 = vmatprep.mubr.bf16.mxu0 %v2250_v27 }
  0x8d   :  { %2053 = vmatprep.mubr.bf16.mxu1 %v2250_v27  ;;  %2082 = vmatpush3.bf16.msra.mxu0 %v2255_v25  ;;  %v1366_v25 = vmax.f32 %v1364_v24, 0.0 }
  0x8e   :  { %2083 = vmatprep.subr.bf16.mxu0 %v2258_v28  ;;  %2175 = vmatpush3.bf16.msra.mxu1 %v2174_v5 }
  0x8f   :  { %2177 = vmatprep.subr.bf16.mxu1 %v2176_v8 }
  0x91   :  { %2084 = vmatpush3.bf16.msra.mxu0 %v2258_v28 }
  0x92   :  { %2085 = vmatprep.subr.bf16.mxu0 %v2261_v29 }
  0x93   :  { %2006 = vmatmul.mubr.bf16.gmra.mrb[12].mxu0 %v2251_v30 }
  0x94   :  { %2054 = vmatmul.mubr.bf16.gmra.mrb[12].mxu1 %v2251_v30  ;;  %2009 = vmatprep.mubr.bf16.mxu0 %v2253_v31 }
  0x95   :  { %2057 = vmatprep.mubr.bf16.mxu1 %v2253_v31  ;;  %2086 = vmatpush3.bf16.msra.mxu0 %v2261_v29 }
  0x96   :  { %2087 = vmatprep.subr.bf16.mxu0 %v2264_v32 }
  0x99   :  { %2088 = vmatpush3.bf16.msra.mxu0 %v2264_v32 }
  0x9b   :  { %2010 = vmatmul.mubr.bf16.gmra.mrb[16].mxu0 %v2254_v33 }
  0x9c   :  { %2058 = vmatmul.mubr.bf16.gmra.mrb[16].mxu1 %v2254_v33  ;;  %2013 = vmatprep.mubr.bf16.mxu0 %v2256_v34 }
  0x9d   :  { %2061 = vmatprep.mubr.bf16.mxu1 %v2256_v34 }
  0xa3   :  { %2014 = vmatmul.mubr.bf16.gmra.mrb[20].mxu0 %v2257_v35 }
  0xa4   :  { %2062 = vmatmul.mubr.bf16.gmra.mrb[20].mxu1 %v2257_v35  ;;  %2017 = vmatprep.mubr.bf16.mxu0 %v2259_v36 }
  0xa5   :  { %2065 = vmatprep.mubr.bf16.mxu1 %v2259_v36 }
  0xab   :  { %2018 = vmatmul.mubr.bf16.gmra.mrb[24].mxu0 %v2260_v37 }
  0xac   :  { %2066 = vmatmul.mubr.bf16.gmra.mrb[24].mxu1 %v2260_v37  ;;  %2021 = vmatprep.mubr.bf16.mxu0 %v2262_v38 }
  0xad   :  { %2069 = vmatprep.mubr.bf16.mxu1 %v2262_v38 }
  0xb3   :  { %2022 = vmatmul.mubr.bf16.gmra.mrb[28].mxu0 %v2263_v39 }
  0xb4   :  { %2070 = vmatmul.mubr.bf16.gmra.mrb[28].mxu1 %v2263_v39  ;;  %2089 = vmatprep.mubr.bf16.mxu0 %v2545_v11  ;;  %v2178_v11 = vpack.c.bf16 %v1432_v10, %v1431_v9 }
  0xb5   :  { %1524 = vmatprep.mubr.f32.mxu1 %v1366_v25 }
  0xb6   :  { %2179 = vmatpush3.bf16.msra.mxu1 %v2178_v11 }
  0xb7   :  { %2181 = vmatprep.subr.bf16.mxu1 %v2180_v14 }
  0xba   :  { %2183 = vmatpush3.bf16.msra.mxu1 %v2182_v17 }
  0xbb   :  { %2090 = vmatmul.mubr.bf16.vlgmr.msra.gmra.mrb[32].mxu0 %v2549_v18  ;;  %v1451_v18 = vld [vmem:[#allocation8 + $0xf0] sm:$0xff] }
  0xbc   :  { %2093 = vmatprep.mubr.bf16.mxu0 %v2551_v19  ;;  %v1452_v19 = vld [vmem:[#allocation8 + $0xf8] sm:$0xff] }
  0xbd   :  { %v2184_v20 = vpack.c.bf16 %v1452_v19, %v1451_v18 }
  0xbf   :  { %2185 = vmatprep.subr.bf16.mxu1 %v2184_v20 }
  0xc3   :  { %2094 = vmatmul.mubr.bf16.gmra.mrb[36].mxu0 %v2245_v22  ;;  %v1436_v22 = vld [vmem:[#allocation8 + $0x78] sm:$0xff] }
  0xc4   :  { %2097 = vmatprep.mubr.bf16.mxu0 %v2247_v23  ;;  %v2186_v23 = vpack.c.bf16 %v1436_v22, %v1435_v21 }
  0xc6   :  { %2187 = vmatpush3.bf16.msra.mxu1 %v2186_v23 }
  0xcb   :  { %2098 = vmatmul.mubr.bf16.gmra.mrb[40].mxu0 %v2248_v26 }
  0xcc   :  { %2101 = vmatprep.mubr.bf16.mxu0 %v2250_v27 }
  0xd3   :  { %2102 = vmatmul.mubr.bf16.gmra.mrb[44].mxu0 %v2251_v30 }
  0xd4   :  { %2105 = vmatprep.mubr.bf16.mxu0 %v2253_v31 }
  0xdb   :  { %2106 = vmatmul.mubr.bf16.gmra.mrb[48].mxu0 %v2254_v33 }
  0xdc   :  { %2109 = vmatprep.mubr.bf16.mxu0 %v2256_v34 }
  0xe3   :  { %2110 = vmatmul.mubr.bf16.gmra.mrb[52].mxu0 %v2257_v35 }
  0xe4   :  { %2113 = vmatprep.mubr.bf16.mxu0 %v2259_v36 }
  0xeb   :  { %2114 = vmatmul.mubr.bf16.gmra.mrb[56].mxu0 %v2260_v37 }
  0xec   :  { %2117 = vmatprep.mubr.bf16.mxu0 %v2262_v38 }
  0xf3   :  { %2118 = vmatmul.mubr.bf16.gmra.mrb[60].mxu0 %v2263_v39 }
 0x14e   :  { %v1995_v26 = vpop.f32.mrb[0].mxu0 }
 0x14f   :  { %v2043_v27 = vpop.f32.mrb[0].mxu1  ;;  %v328_v28 = vpop.f32.mrb[1].mxu0 }
 0x150   :  { %v717_v29 = vrot.slane %v2043_v27, 1  ;;  %v554_v30 = vpop.f32.mrb[1].mxu1  ;;  %v1996_v31 = vpop.f32.mrb[2].mxu0 }
 0x151   :  { %v714_v32 = vrot.slane %v554_v30, 1  ;;  %v2044_v33 = vpop.f32.mrb[2].mxu1  ;;  %v331_v34 = vpop.f32.mrb[3].mxu0 }
 0x152   :  { %v718_v35 = vrot.slane %v2044_v33, 1  ;;  %v557_v36 = vpop.f32.mrb[3].mxu1 }
 0x153   :  { %v715_v37 = vrot.slane %v557_v36, 1 }
 0x154   :  { %v719_v38 = vsel %vm713_vm0, %v717_v29, %v718_v35  ;;  %v2561_v39 = vadd.f32 %v1996_v31, %v718_v35 }
 0x155   :  { %v2563_v40 = vadd.f32 %v1995_v26, %v719_v38  ;;  %v716_v41 = vsel %vm713_vm0, %v714_v32, %v715_v37  ;;  %v2566_v42 = vadd.f32 %v715_v37, %v331_v34 }
 0x156   :  { %v2568_v43 = vadd.f32 %v716_v41, %v328_v28  ;;  %v1999_v44 = vpop.f32.mrb[4].mxu0 }
 0x157   :  { %v2047_v45 = vpop.f32.mrb[4].mxu1  ;;  %v344_v46 = vpop.f32.mrb[5].mxu0 }
 0x158   :  { %v723_v47 = vrot.slane %v2047_v45, 1  ;;  %v570_v48 = vpop.f32.mrb[5].mxu1  ;;  %v2000_v49 = vpop.f32.mrb[6].mxu0 }
 0x159   :  { %v720_v50 = vrot.slane %v570_v48, 1  ;;  %v2048_v51 = vpop.f32.mrb[6].mxu1  ;;  %v347_v52 = vpop.f32.mrb[7].mxu0 }
 0x15a   :  { %v724_v53 = vrot.slane %v2048_v51, 1  ;;  %v573_v54 = vpop.f32.mrb[7].mxu1 }
 0x15b   :  { %v721_v55 = vrot.slane %v573_v54, 1 }
 0x15c   :  { %v725_v56 = vsel %vm713_vm0, %v723_v47, %v724_v53  ;;  %v2571_v57 = vadd.f32 %v2000_v49, %v724_v53 }
 0x15d   :  { %v2573_v58 = vadd.f32 %v1999_v44, %v725_v56  ;;  %v722_v59 = vsel %vm713_vm0, %v720_v50, %v721_v55  ;;  %v2576_v60 = vadd.f32 %v721_v55, %v347_v52 }
 0x15e   :  { %v2578_v61 = vadd.f32 %v722_v59, %v344_v46  ;;  %v2003_v62 = vpop.f32.mrb[8].mxu0 }
 0x15f   :  { %v2051_v63 = vpop.f32.mrb[8].mxu1  ;;  %v360_v0 = vpop.f32.mrb[9].mxu0 }
 0x160   :  { %v729_v1 = vrot.slane %v2051_v63, 1  ;;  %v586_v2 = vpop.f32.mrb[9].mxu1  ;;  %v2004_v3 = vpop.f32.mrb[10].mxu0 }
 0x161   :  { %v726_v4 = vrot.slane %v586_v2, 1  ;;  %v2052_v5 = vpop.f32.mrb[10].mxu1  ;;  %v363_v6 = vpop.f32.mrb[11].mxu0 }
 0x162   :  { %v730_v7 = vrot.slane %v2052_v5, 1  ;;  %v589_v8 = vpop.f32.mrb[11].mxu1 }
 0x163   :  { %v727_v9 = vrot.slane %v589_v8, 1 }
 0x164   :  { %v731_v10 = vsel %vm713_vm0, %v729_v1, %v730_v7  ;;  %v2581_v11 = vadd.f32 %v2004_v3, %v730_v7 }
 0x165   :  { %v2583_v12 = vadd.f32 %v2003_v62, %v731_v10  ;;  %v728_v13 = vsel %vm713_vm0, %v726_v4, %v727_v9  ;;  %v2586_v14 = vadd.f32 %v727_v9, %v363_v6 }
 0x166   :  { %v2588_v15 = vadd.f32 %v728_v13, %v360_v0  ;;  %v2007_v16 = vpop.f32.mrb[12].mxu0 }
 0x167   :  { %v2055_v17 = vpop.f32.mrb[12].mxu1  ;;  %v376_v18 = vpop.f32.mrb[13].mxu0 }
 0x168   :  { %v735_v19 = vrot.slane %v2055_v17, 1  ;;  %v602_v20 = vpop.f32.mrb[13].mxu1  ;;  %v2008_v21 = vpop.f32.mrb[14].mxu0 }
 0x169   :  { %v732_v22 = vrot.slane %v602_v20, 1  ;;  %v2056_v23 = vpop.f32.mrb[14].mxu1  ;;  %v379_v24 = vpop.f32.mrb[15].mxu0 }
 0x16a   :  { %v736_v25 = vrot.slane %v2056_v23, 1  ;;  %v605_v26 = vpop.f32.mrb[15].mxu1 }
 0x16b   :  { %v733_v27 = vrot.slane %v605_v26, 1 }
 0x16c   :  { %v737_v28 = vsel %vm713_vm0, %v735_v19, %v736_v25  ;;  %v2591_v29 = vadd.f32 %v2008_v21, %v736_v25 }
 0x16d   :  { %v2593_v30 = vadd.f32 %v2007_v16, %v737_v28  ;;  %v734_v31 = vsel %vm713_vm0, %v732_v22, %v733_v27  ;;  %v2596_v32 = vadd.f32 %v733_v27, %v379_v24 }
 0x16e   :  { %v2598_v33 = vadd.f32 %v734_v31, %v376_v18  ;;  %v2011_v34 = vpop.f32.mrb[16].mxu0 }
 0x16f   :  { %v2059_v35 = vpop.f32.mrb[16].mxu1  ;;  %v392_v36 = vpop.f32.mrb[17].mxu0 }
 0x170   :  { %v741_v37 = vrot.slane %v2059_v35, 1  ;;  %v618_v38 = vpop.f32.mrb[17].mxu1  ;;  %v2012_v41 = vpop.f32.mrb[18].mxu0 }
 0x171   :  { %v738_v44 = vrot.slane %v618_v38, 1  ;;  %v2060_v45 = vpop.f32.mrb[18].mxu1  ;;  %v395_v46 = vpop.f32.mrb[19].mxu0 }
 0x172   :  { %v742_v47 = vrot.slane %v2060_v45, 1  ;;  %v621_v48 = vpop.f32.mrb[19].mxu1 }
 0x173   :  { %v739_v49 = vrot.slane %v621_v48, 1 }
 0x174   :  { %v743_v50 = vsel %vm713_vm0, %v741_v37, %v742_v47  ;;  %v2601_v51 = vadd.f32 %v2012_v41, %v742_v47 }
 0x175   :  { %v2603_v52 = vadd.f32 %v2011_v34, %v743_v50  ;;  %v740_v53 = vsel %vm713_vm0, %v738_v44, %v739_v49  ;;  %v2606_v54 = vadd.f32 %v739_v49, %v395_v46 }
 0x176   :  { %v2608_v55 = vadd.f32 %v740_v53, %v392_v36  ;;  %v2015_v56 = vpop.f32.mrb[20].mxu0 }
 0x177   :  { %v2063_v59 = vpop.f32.mrb[20].mxu1  ;;  %v408_v62 = vpop.f32.mrb[21].mxu0 }
 0x178   :  { %v747_v63 = vrot.slane %v2063_v59, 1  ;;  %v634_v0 = vpop.f32.mrb[21].mxu1  ;;  %v2016_v1 = vpop.f32.mrb[22].mxu0 }
 0x179   :  { %v744_v2 = vrot.slane %v634_v0, 1  ;;  %v2064_v3 = vpop.f32.mrb[22].mxu1  ;;  %v411_v4 = vpop.f32.mrb[23].mxu0 }
 0x17a   :  { %v748_v5 = vrot.slane %v2064_v3, 1  ;;  %v637_v6 = vpop.f32.mrb[23].mxu1 }
 0x17b   :  { %v745_v7 = vrot.slane %v637_v6, 1 }
 0x17c   :  { %v749_v8 = vsel %vm713_vm0, %v747_v63, %v748_v5  ;;  %v2611_v9 = vadd.f32 %v2016_v1, %v748_v5 }
 0x17d   :  { %v2613_v10 = vadd.f32 %v2015_v56, %v749_v8  ;;  %v746_v13 = vsel %vm713_vm0, %v744_v2, %v745_v7  ;;  %v2616_v16 = vadd.f32 %v745_v7, %v411_v4 }
 0x17e   :  { %v2618_v17 = vadd.f32 %v746_v13, %v408_v62  ;;  %v2019_v18 = vpop.f32.mrb[24].mxu0 }
 0x17f   :  { %v2067_v19 = vpop.f32.mrb[24].mxu1  ;;  %v424_v20 = vpop.f32.mrb[25].mxu0 }
 0x180   :  { %v753_v21 = vrot.slane %v2067_v19, 1  ;;  %v650_v22 = vpop.f32.mrb[25].mxu1  ;;  %v2020_v23 = vpop.f32.mrb[26].mxu0 }
 0x181   :  { %v750_v24 = vrot.slane %v650_v22, 1  ;;  %v2068_v25 = vpop.f32.mrb[26].mxu1  ;;  %v427_v26 = vpop.f32.mrb[27].mxu0 }
 0x182   :  { %v754_v27 = vrot.slane %v2068_v25, 1  ;;  %v653_v28 = vpop.f32.mrb[27].mxu1 }
 0x183   :  { %v751_v31 = vrot.slane %v653_v28, 1 }
 0x184   :  { %v755_v34 = vsel %vm713_vm0, %v753_v21, %v754_v27  ;;  %v2621_v35 = vadd.f32 %v2020_v23, %v754_v27 }
 0x185   :  { %v2623_v36 = vadd.f32 %v2019_v18, %v755_v34  ;;  %v752_v37 = vsel %vm713_vm0, %v750_v24, %v751_v31  ;;  %v2626_v38 = vadd.f32 %v751_v31, %v427_v26 }
 0x186   :  { %v2628_v41 = vadd.f32 %v752_v37, %v424_v20  ;;  %v2023_v44 = vpop.f32.mrb[28].mxu0 }
 0x187   :  { %v2071_v45 = vpop.f32.mrb[28].mxu1  ;;  %v440_v46 = vpop.f32.mrb[29].mxu0 }
 0x188   :  { %v759_v47 = vrot.slane %v2071_v45, 1  ;;  %v666_v48 = vpop.f32.mrb[29].mxu1  ;;  %v2024_v49 = vpop.f32.mrb[30].mxu0 }
 0x189   :  { %v756_v50 = vrot.slane %v666_v48, 1  ;;  %v2072_v53 = vpop.f32.mrb[30].mxu1  ;;  %v443_v56 = vpop.f32.mrb[31].mxu0 }
 0x18a   :  { %v760_v59 = vrot.slane %v2072_v53, 1  ;;  %v669_v62 = vpop.f32.mrb[31].mxu1 }
 0x18b   :  { %v757_v63 = vrot.slane %v669_v62, 1 }
 0x18c   :  { %v761_v0 = vsel %vm713_vm0, %v759_v47, %v760_v59  ;;  %v2631_v1 = vadd.f32 %v2024_v49, %v760_v59 }
 0x18d   :  { %v2633_v2 = vadd.f32 %v2023_v44, %v761_v0  ;;  %v758_v3 = vsel %vm713_vm0, %v756_v50, %v757_v63  ;;  %v2636_v4 = vadd.f32 %v757_v63, %v443_v56 }
 0x18e   :  { %v2638_v5 = vadd.f32 %v758_v3, %v440_v46  ;;  %v2091_v6 = vpop.f32.mrb[32].mxu0 }
 0x18f   :  { %v925_v7 = vpop.f32.mrb[33].mxu0  ;;  %v1088_v13 = vrot.slane %v2091_v6, 2 }
 0x190   :  { %v2092_v8 = vpop.f32.mrb[34].mxu0  ;;  %v1085_v20 = vrot.slane %v925_v7, 2 }
 0x191   :  { %v1089_v18 = vrot.slane %v2092_v8, 2  ;;  %v928_v19 = vpop.f32.mrb[35].mxu0 }
 0x192   :  { %v1086_v21 = vrot.slane %v928_v19, 2 }
 0x193   :  { %v1090_v22 = vsel %vm1084_vm1, %v1088_v13, %v1089_v18  ;;  %v1168_v23 = vadd.f32 %v1089_v18, %v2561_v39 }
 0x194   :  { %v1167_v24 = vadd.f32 %v1090_v22, %v2563_v40  ;;  %v1087_v25 = vsel %vm1084_vm1, %v1085_v20, %v1086_v21  ;;  %v1166_v26 = vadd.f32 %v1086_v21, %v2566_v42 }
 0x195   :  { %v1205_v27 = vsel %vm1084_vm1, %v1168_v23, -inf  ;;  %v1165_v28 = vadd.f32 %v1087_v25, %v2568_v43 }
 0x196   :  { %v1206_v31 = vmax.f32 %v1167_v24, %v1205_v27  ;;  %v1197_v34 = vsel %vm1084_vm1, %v1166_v26, -inf  ;;  %v2095_v37 = vpop.f32.mrb[36].mxu0 }
 0x197   :  { %v1198_v44 = vmax.f32 %v1165_v28, %v1197_v34  ;;  %v941_v45 = vpop.f32.mrb[37].mxu0  ;;  %v1094_v39 = vrot.slane %v2095_v37, 2 }
 0x198   :  { %v1207_v46 = vrot.slane %v1206_v31, 4  ;;  %v2096_v47 = vpop.f32.mrb[38].mxu0  ;;  %v1091_v53 = vrot.slane %v941_v45, 2 }
 0x199   :  { %v1199_v48 = vrot.slane %v1198_v44, 4  ;;  %v1095_v49 = vrot.slane %v2096_v47, 2  ;;  %v944_v40 = vpop.f32.mrb[39].mxu0 }
 0x19a   :  { %v1208_v50 = vmax.f32 %v1206_v31, %v1207_v46  ;;  %v1092_v56 = vrot.slane %v944_v40, 2 }
 0x19b   :  { %v1200_v42 = vmax.f32 %v1198_v44, %v1199_v48  ;;  %v1096_v59 = vsel %vm1084_vm1, %v1094_v39, %v1095_v49  ;;  %v1172_v43 = vadd.f32 %v1095_v49, %v2571_v57 }
 0x19c   :  { %v1209_v62 = vrot.slane %v1208_v50, 2  ;;  %v1171_v63 = vadd.f32 %v1096_v59, %v2573_v58  ;;  %v1093_v0 = vsel %vm1084_vm1, %v1091_v53, %v1092_v56  ;;  %v1170_v3 = vadd.f32 %v1092_v56, %v2576_v60  ;;  %v2659_v58 = vld [vmem:[%s2890_s3] ss:$0 sm:$0xff] }
 0x19d   :  { %v1201_v6 = vrot.slane %v1200_v42, 2  ;;  %v1221_v7 = vsel %vm1084_vm1, %v1172_v43, -inf  ;;  %v1169_v8 = vadd.f32 %v1093_v0, %v2578_v61 }
 0x19e   :  { %v1210_v13 = vmax.f32 %v1208_v50, %v1209_v62  ;;  %v1222_v18 = vmax.f32 %v1171_v63, %v1221_v7  ;;  %v1213_v19 = vsel %vm1084_vm1, %v1170_v3, -inf  ;;  %v2099_v20 = vpop.f32.mrb[40].mxu0 }
 0x19f   :  { %v1202_v21 = vmax.f32 %v1200_v42, %v1201_v6  ;;  %v1214_v22 = vmax.f32 %v1169_v8, %v1213_v19  ;;  %v957_v57 = vpop.f32.mrb[41].mxu0  ;;  %v1100_v27 = vrot.slane %v2099_v20, 2 }
 0x1a0   :  { %v1211_v23 = vrot.slane %v1210_v13, 1  ;;  %v1223_v60 = vrot.slane %v1222_v18, 4  ;;  %v2100_v24 = vpop.f32.mrb[42].mxu0  ;;  %v1097_v37 = vrot.slane %v957_v57, 2 }
 0x1a1   :  { %v1203_v25 = vrot.slane %v1202_v21, 1  ;;  %v1215_v26 = vrot.slane %v1214_v22, 4  ;;  %v1101_v61 = vrot.slane %v2100_v24, 2  ;;  %v960_v28 = vpop.f32.mrb[43].mxu0 }
 0x1a2   :  { %v1212_v31 = vmax.f32 %v1210_v13, %v1211_v23  ;;  %v1224_v34 = vmax.f32 %v1222_v18, %v1223_v60  ;;  %v1098_v44 = vrot.slane %v960_v28, 2 }
 0x1a3   :  { %v1204_v45 = vmax.f32 %v1202_v21, %v1203_v25  ;;  %v1216_v46 = vmax.f32 %v1214_v22, %v1215_v26  ;;  %v1102_v47 = vsel %vm1084_vm1, %v1100_v27, %v1101_v61  ;;  %v1176_v48 = vadd.f32 %v1101_v61, %v2581_v11 }
 0x1a4   :  { %v2664_v39 = vadd.f32 %v2659_v58, %v1212_v31  ;;  %v1225_v49 = vrot.slane %v1224_v34, 2  ;;  %v1175_v40 = vadd.f32 %v1102_v47, %v2583_v12  ;;  %v1099_v50 = vsel %vm1084_vm1, %v1097_v37, %v1098_v44 }
 0x1a5   :  { %v2669_v53 = vadd.f32 %v2659_v58, %v1204_v45  ;;  %v1217_v56 = vrot.slane %v1216_v46, 2  ;;  %v1237_v42 = vsel %vm1084_vm1, %v1176_v48, -inf  ;;  %v1173_v59 = vadd.f32 %v1099_v50, %v2588_v15 }
 0x1a6   :  { %v1226_v43 = vmax.f32 %v1224_v34, %v1225_v49  ;;  %v1238_v62 = vmax.f32 %v1175_v40, %v1237_v42  ;;  %v1174_v11 = vadd.f32 %v1098_v44, %v2586_v14  ;;  %v2103_v63 = vpop.f32.mrb[44].mxu0  ;;  %v1349_v6 = vmax.f32 %v2664_v39, 0.0 }
 0x1a7   :  { %v1218_v0 = vmax.f32 %v1216_v46, %v1217_v56  ;;  %v973_v3 = vpop.f32.mrb[45].mxu0  ;;  %v1348_v12 = vmax.f32 %v2669_v53, 0.0  ;;  %v1106_v20 = vrot.slane %v2103_v63, 2 }
 0x1a8   :  { %v1239_v7 = vrot.slane %v1238_v62, 4  ;;  %v1229_v8 = vsel %vm1084_vm1, %v1174_v11, -inf  ;;  %v2104_v13 = vpop.f32.mrb[46].mxu0  ;;  %v1227_v22 = vrot.slane %v1226_v43, 1  ;;  %v1103_v23 = vrot.slane %v973_v3, 2 }
 0x1a9   :  { %v1219_v18 = vrot.slane %v1218_v0, 1  ;;  %v1230_v19 = vmax.f32 %v1173_v59, %v1229_v8  ;;  %v1107_v21 = vrot.slane %v2104_v13, 2  ;;  %v976_v15 = vpop.f32.mrb[47].mxu0  ;;  %v1384_v27 = vrot.slane %v1349_v6, 7 }
 0x1aa   :  { %v1240_v57 = vmax.f32 %v1238_v62, %v1239_v7  ;;  %v1104_v14 = vrot.slane %v976_v15, 2  ;;  %v1228_v49 = vmax.f32 %v1226_v43, %v1227_v22 }
 0x1ab   :  { %v1220_v60 = vmax.f32 %v1218_v0, %v1219_v18  ;;  %v1231_v24 = vrot.slane %v1230_v19, 4  ;;  %v1108_v25 = vsel %vm1084_vm1, %v1106_v20, %v1107_v21  ;;  %v1180_v26 = vadd.f32 %v1107_v21, %v2591_v29 }
 0x1ac   :  { %v1241_v61 = vrot.slane %v1240_v57, 2  ;;  %v1179_v28 = vadd.f32 %v1108_v25, %v2593_v30  ;;  %v1105_v31 = vsel %vm1084_vm1, %v1103_v23, %v1104_v14  ;;  %v1178_v29 = vadd.f32 %v1104_v14, %v2596_v32 }
 0x1ad   :  { %v2684_v34 = vadd.f32 %v2659_v58, %v1220_v60  ;;  %v1232_v37 = vmax.f32 %v1230_v19, %v1231_v24  ;;  %v1253_v44 = vsel %vm1084_vm1, %v1180_v26, -inf  ;;  %v1177_v45 = vadd.f32 %v1105_v31, %v2598_v33 }
 0x1ae   :  { %v1242_v46 = vmax.f32 %v1240_v57, %v1241_v61  ;;  %v1254_v47 = vmax.f32 %v1179_v28, %v1253_v44  ;;  %v2107_v48 = vpop.f32.mrb[48].mxu0  ;;  %v1245_v42 = vsel %vm1084_vm1, %v1178_v29, -inf  ;;  %v1386_v33 = vsel %vm1385_vm2, %v1384_v27, %v1348_v12 }
 0x1af   :  { %v1233_v40 = vrot.slane %v1232_v37, 2  ;;  %v989_v50 = vpop.f32.mrb[49].mxu0  ;;  %v1350_v30 = vmax.f32 %v2684_v34, 0.0  ;;  %v1246_v11 = vmax.f32 %v1177_v45, %v1245_v42  ;;  %v1112_v63 = vrot.slane %v2107_v48, 2 }
 0x1b0   :  { %v1255_v56 = vrot.slane %v1254_v47, 4  ;;  %v2108_v59 = vpop.f32.mrb[50].mxu0  ;;  %v1243_v32 = vrot.slane %v1242_v46, 1  ;;  %v2695_v8 = vadd.f32 %v2659_v58, %v1228_v49  ;;  %v1109_v19 = vrot.slane %v989_v50, 2 }
 0x1b1   :  { %v1234_v62 = vmax.f32 %v1232_v37, %v1233_v40  ;;  %v992_v0 = vpop.f32.mrb[51].mxu0  ;;  %v1113_v43 = vrot.slane %v2108_v59, 2  ;;  %v1247_v18 = vrot.slane %v1246_v11, 4  ;;  %v1387_v20 = vrot.slane %v1350_v30, 6 }
 0x1b2   :  { %v1256_v3 = vmax.f32 %v1254_v47, %v1255_v56  ;;  %v1110_v7 = vrot.slane %v992_v0, 2  ;;  %v1244_v24 = vmax.f32 %v1242_v46, %v1243_v32  ;;  %v1351_v45 = vmax.f32 %v2695_v8, 0.0 }
 0x1b3   :  { %v1235_v13 = vrot.slane %v1234_v62, 1  ;;  %v1114_v15 = vsel %vm1084_vm1, %v1112_v63, %v1113_v43  ;;  %v1184_v22 = vadd.f32 %v1113_v43, %v2601_v51  ;;  %v1248_v23 = vmax.f32 %v1246_v11, %v1247_v18 }
 0x1b4   :  { %v1257_v21 = vrot.slane %v1256_v3, 2  ;;  %v1183_v14 = vadd.f32 %v1114_v15, %v2603_v52  ;;  %v1111_v60 = vsel %vm1084_vm1, %v1109_v19, %v1110_v7  ;;  %v1182_v51 = vadd.f32 %v1110_v7, %v2606_v54 }
 0x1b5   :  { %v1236_v57 = vmax.f32 %v1234_v62, %v1235_v13  ;;  %v1269_v26 = vsel %vm1084_vm1, %v1184_v22, -inf  ;;  %v1181_v27 = vadd.f32 %v1111_v60, %v2608_v55  ;;  %v1249_v31 = vrot.slane %v1248_v23, 2 }
 0x1b6   :  { %v1258_v25 = vmax.f32 %v1256_v3, %v1257_v21  ;;  %v2111_v61 = vpop.f32.mrb[52].mxu0  ;;  %v1270_v37 = vmax.f32 %v1183_v14, %v1269_v26  ;;  %v1389_v46 = vsel %vm1388_vm3, %v1387_v20, %v1386_v33  ;;  %v1261_v55 = vsel %vm1084_vm1, %v1182_v51, -inf }
 0x1b7   :  { %v2706_v28 = vadd.f32 %v2659_v58, %v1236_v57  ;;  %v1005_v44 = vpop.f32.mrb[53].mxu0  ;;  %v1250_v29 = vmax.f32 %v1248_v23, %v1249_v31  ;;  %v1118_v49 = vrot.slane %v2111_v61, 2  ;;  %v1262_v50 = vmax.f32 %v1181_v27, %v1261_v55 }
 0x1b8   :  { %v1259_v52 = vrot.slane %v1258_v25, 1  ;;  %v2112_v47 = vpop.f32.mrb[54].mxu0  ;;  %v1271_v48 = vrot.slane %v1270_v37, 4  ;;  %v1115_v56 = vrot.slane %v1005_v44, 2  ;;  %v2713_v54 = vadd.f32 %v2659_v58, %v1244_v24 }
 0x1b9   :  { %v1008_v40 = vpop.f32.mrb[55].mxu0  ;;  %v1119_v42 = vrot.slane %v2112_v47, 2  ;;  %v1352_v62 = vmax.f32 %v2706_v28, 0.0  ;;  %v1251_v11 = vrot.slane %v1250_v29, 1  ;;  %v1263_v33 = vrot.slane %v1262_v50, 4 }
 0x1ba   :  { %v1116_v59 = vrot.slane %v1008_v40, 2  ;;  %v1272_v63 = vmax.f32 %v1270_v37, %v1271_v48  ;;  %v1260_v43 = vmax.f32 %v1258_v25, %v1259_v52  ;;  %v1390_v19 = vrot.slane %v1351_v45, 5 }
 0x1bb   :  { %v1120_v0 = vsel %vm1084_vm1, %v1118_v49, %v1119_v42  ;;  %v1188_v32 = vadd.f32 %v1119_v42, %v2611_v9  ;;  %v1252_v7 = vmax.f32 %v1250_v29, %v1251_v11  ;;  %v1264_v57 = vmax.f32 %v1262_v50, %v1263_v33  ;;  %v1365_v50 = vld [vmem:[#allocation5 + $0x8] sm:$0xff] }
 0x1bc   :  { %v1117_v3 = vsel %vm1084_vm1, %v1115_v56, %v1116_v59  ;;  %v1187_v13 = vadd.f32 %v1120_v0, %v2613_v10  ;;  %v1186_v21 = vadd.f32 %v1116_v59, %v2616_v16  ;;  %v1273_v22 = vrot.slane %v1272_v63, 2 }
 0x1bd   :  { %v1185_v18 = vadd.f32 %v1117_v3, %v2618_v17  ;;  %v1285_v20 = vsel %vm1084_vm1, %v1188_v32, -inf  ;;  %v1353_v14 = vmax.f32 %v2713_v54, 0.0  ;;  %v2727_v10 = vadd.f32 %v2659_v58, %v1252_v7 }
 0x1be   :  { %v2115_v15 = vpop.f32.mrb[56].mxu0  ;;  %v1286_v9 = vmax.f32 %v1187_v13, %v1285_v20  ;;  %v1277_v17 = vsel %vm1084_vm1, %v1186_v21, -inf  ;;  %v1392_v24 = vsel %vm1391_vm4, %v1390_v19, %v1389_v46  ;;  %v1393_v16 = vrot.slane %v1352_v62, 4 }
 0x1bf   :  { %v1021_v23 = vpop.f32.mrb[57].mxu0  ;;  %v1278_v26 = vmax.f32 %v1185_v18, %v1277_v17  ;;  %v2734_v61 = vadd.f32 %v2659_v58, %v1260_v43  ;;  %v1124_v31 = vrot.slane %v2115_v15, 2  ;;  %v1274_v52 = vmax.f32 %v1272_v63, %v1273_v22 }
 0x1c0   :  { %v2116_v60 = vpop.f32.mrb[58].mxu0  ;;  %v1287_v25 = vrot.slane %v1286_v9, 4  ;;  %v1121_v37 = vrot.slane %v1021_v23, 2  ;;  %v1265_v47 = vrot.slane %v1264_v57, 2  ;;  %v1354_v46 = vmax.f32 %v2727_v10, 0.0 }
 0x1c1   :  { %v1024_v27 = vpop.f32.mrb[59].mxu0  ;;  %v1125_v51 = vrot.slane %v2116_v60, 2  ;;  %v1279_v48 = vrot.slane %v1278_v26, 4  ;;  %v1355_v59 = vmax.f32 %v2734_v61, 0.0  ;;  %v1395_v11 = vsel %vm1394_vm5, %v1393_v16, %v1392_v24 }
 0x1c2   :  { %v1122_v44 = vrot.slane %v1024_v27, 2  ;;  %v1288_v29 = vmax.f32 %v1286_v9, %v1287_v25  ;;  %v1396_v7 = vrot.slane %v1353_v14, 3  ;;  %v1367_v18 = vmax.f32 %v1365_v50, 0.0 }
 0x1c3   :  { %v1126_v55 = vsel %vm1084_vm1, %v1124_v31, %v1125_v51  ;;  %v1192_v49 = vadd.f32 %v1125_v51, %v2621_v35  ;;  %v1280_v56 = vmax.f32 %v1278_v26, %v1279_v48  ;;  %v1266_v19 = vmax.f32 %v1264_v57, %v1265_v47 }
 0x1c4   :  { %v1123_v40 = vsel %vm1084_vm1, %v1121_v37, %v1122_v44  ;;  %v1191_v42 = vadd.f32 %v1126_v55, %v2623_v36  ;;  %v1289_v63 = vrot.slane %v1288_v29, 2  ;;  %v1190_v32 = vadd.f32 %v1122_v44, %v2626_v38 }
 0x1c5   :  { %v1301_v33 = vsel %vm1084_vm1, %v1192_v49, -inf  ;;  %v1189_v0 = vadd.f32 %v1123_v40, %v2628_v41  ;;  %v1281_v43 = vrot.slane %v1280_v56, 2  ;;  %v1275_v36 = vrot.slane %v1274_v52, 1 }
 0x1c6   :  { %v2119_v3 = vpop.f32.mrb[60].mxu0  ;;  %v1302_v35 = vmax.f32 %v1191_v42, %v1301_v33  ;;  %v1293_v20 = vsel %vm1084_vm1, %v1190_v32, -inf  ;;  %v1399_v21 = vrot.slane %v1354_v46, 2  ;;  %v1398_v38 = vsel %vm1397_vm6, %v1396_v7, %v1395_v11 }
 0x1c7   :  { %v1037_v13 = vpop.f32.mrb[61].mxu0  ;;  %v1282_v22 = vmax.f32 %v1280_v56, %v1281_v43  ;;  %v1402_v9 = vrot.slane %v1355_v59, 1  ;;  %v1290_v17 = vmax.f32 %v1288_v29, %v1289_v63  ;;  %v1294_v60 = vmax.f32 %v1189_v0, %v1293_v20 }
 0x1c8   :  { %v2120_v15 = vpop.f32.mrb[62].mxu0  ;;  %v1303_v41 = vrot.slane %v1302_v35, 4  ;;  %v1401_v24 = vsel %vm1400_vm7, %v1399_v21, %v1398_v38  ;;  %v1130_v26 = vrot.slane %v2119_v3, 2  ;;  %v1127_v31 = vrot.slane %v1037_v13, 2 }
 0x1c9   :  { %v1040_v23 = vpop.f32.mrb[63].mxu0  ;;  %v1283_v16 = vrot.slane %v1282_v22, 1  ;;  %v1404_v25 = vsel %vm1403_vm8, %v1402_v9, %v1401_v24  ;;  %v1295_v27 = vrot.slane %v1294_v60, 4  ;;  %v1131_v37 = vrot.slane %v2120_v15, 2 }
 0x1ca   :  { %v1304_v57 = vmax.f32 %v1302_v35, %v1303_v41  ;;  %1525 = vmatmul.mubr.f32.vlgmr.msra.gmra.mrb[32].mxu1 %v1404_v25  ;;  %v1128_v51 = vrot.slane %v1040_v23, 2  ;;  %v1276_v44 = vmax.f32 %v1274_v52, %v1275_v36  ;;  %v1267_v47 = vrot.slane %v1266_v19, 1 }
 0x1cb   :  { %1529 = vmatprep.mubr.f32.mxu1 %v1367_v18  ;;  %v1296_v55 = vmax.f32 %v1294_v60, %v1295_v27  ;;  %v1132_v29 = vsel %vm1084_vm1, %v1130_v26, %v1131_v37  ;;  %v1196_v49 = vadd.f32 %v1131_v37, %v2631_v1  ;;  %v1291_v50 = vrot.slane %v1290_v17, 1 }
 0x1cc   :  { %v1305_v48 = vrot.slane %v1304_v57, 2  ;;  %v1129_v40 = vsel %vm1084_vm1, %v1127_v31, %v1128_v51  ;;  %v1284_v56 = vmax.f32 %v1282_v22, %v1283_v16  ;;  %v1195_v11 = vadd.f32 %v1132_v29, %v2633_v2 }
 0x1cd   :  { %v1297_v63 = vrot.slane %v1296_v55, 2  ;;  %v1317_v33 = vsel %vm1084_vm1, %v1196_v49, -inf  ;;  %v1193_v52 = vadd.f32 %v1129_v40, %v2638_v5  ;;  %v1194_v0 = vadd.f32 %v1128_v51, %v2636_v4 }
 0x1ce   :  { %v1306_v42 = vmax.f32 %v1304_v57, %v1305_v48  ;;  %v1318_v32 = vmax.f32 %v1195_v11, %v1317_v33  ;;  %v2764_v3 = vadd.f32 %v2659_v58, %v1276_v44  ;;  %v1268_v43 = vmax.f32 %v1266_v19, %v1267_v47 }
 0x1cf   :  { %v1298_v1 = vmax.f32 %v1296_v55, %v1297_v63  ;;  %v1309_v35 = vsel %vm1084_vm1, %v1194_v0, -inf  ;;  %v2768_v7 = vadd.f32 %v2659_v58, %v1284_v56  ;;  %v1292_v18 = vmax.f32 %v1290_v17, %v1291_v50 }
 0x1d0   :  { %v1319_v13 = vrot.slane %v1318_v32, 4  ;;  %v1310_v2 = vmax.f32 %v1193_v52, %v1309_v35  ;;  %v1307_v36 = vrot.slane %v1306_v42, 1  ;;  %v1357_v4 = vmax.f32 %v2764_v3, 0.0 }
 0x1d1   :  { %v1299_v20 = vrot.slane %v1298_v1, 1  ;;  %v2772_v15 = vadd.f32 %v2659_v58, %v1268_v43  ;;  %v1358_v19 = vmax.f32 %v2768_v7, 0.0  ;;  %v2776_v9 = vadd.f32 %v2659_v58, %v1292_v18 }
 0x1d2   :  { %v1320_v21 = vmax.f32 %v1318_v32, %v1319_v13  ;;  %v1311_v5 = vrot.slane %v1310_v2, 4  ;;  %v1308_v23 = vmax.f32 %v1306_v42, %v1307_v36  ;;  %v1405_v16 = vrot.slane %v1357_v4, 7 }
 0x1d3   :  { %v1300_v22 = vmax.f32 %v1298_v1, %v1299_v20  ;;  %v1356_v57 = vmax.f32 %v2772_v15, 0.0  ;;  %v1407_v25 = vrot.slane %v1358_v19, 6  ;;  %v1359_v37 = vmax.f32 %v2776_v9, 0.0  ;;  %v1847_v20 = vld [vmem:[%s2892_s5] ss:$0 sm:$0xff] }
 0x1d4   :  { %v1321_v41 = vrot.slane %v1320_v21, 2  ;;  %v1312_v38 = vmax.f32 %v1310_v2, %v1311_v5  ;;  %v2789_v51 = vadd.f32 %v2659_v58, %v1308_v23  ;;  %v1848_v23 = vld [vmem:[%s2893_s6] ss:$0 sm:$0xff] }
 0x1d5   :  { %v2779_v17 = vadd.f32 %v2659_v58, %v1300_v22  ;;  %v1406_v48 = vsel %vm1385_vm2, %v1405_v16, %v1356_v57  ;;  %v1409_v56 = vrot.slane %v1359_v37, 5 }
 0x1d6   :  { %v1322_v60 = vmax.f32 %v1320_v21, %v1321_v41  ;;  %v1313_v24 = vrot.slane %v1312_v38, 2  ;;  %v1408_v49 = vsel %vm1388_vm3, %v1407_v25, %v1406_v48  ;;  %v1361_v50 = vmax.f32 %v2789_v51, 0.0  ;;  %v1690_v25 = vld [vmem:[#allocation10] sm:$0xff]  ;;  %v1693_v48 = vld [vmem:[#allocation10 + $0x18] sm:$0xff] }
 0x1d7   :  { %v1360_v26 = vmax.f32 %v2779_v17, 0.0  ;;  %v1410_v63 = vsel %vm1391_vm4, %v1409_v56, %v1408_v49  ;;  %v2424_v49 = vmov 0.0   ;;  %v1695_v56 = vld [vmem:[#allocation10 + $0x28] sm:$0xff] }
 0x1d8   :  { %v1323_v27 = vrot.slane %v1322_v60, 1  ;;  %v1314_v31 = vmax.f32 %v1312_v38, %v1313_v24  ;;  %v1413_v0 = vrot.slane %v1361_v50, 3 }
 0x1d9   :  { %v1411_v40 = vrot.slane %v1360_v26, 4 }
 0x1da   :  { %v1315_v44 = vrot.slane %v1314_v31, 1  ;;  %v1324_v47 = vmax.f32 %v1322_v60, %v1323_v27  ;;  %v1691_v27 = vld [vmem:[#allocation10 + $0x8] sm:$0xff] }
 0x1db   :  { %v1412_v52 = vsel %vm1394_vm5, %v1411_v40, %v1410_v63  ;;  %v1694_v40 = vld [vmem:[#allocation10 + $0x20] sm:$0xff] }
 0x1dc   :  { %v1316_v55 = vmax.f32 %v1314_v31, %v1315_v44  ;;  %v2795_v29 = vadd.f32 %v2659_v58, %v1324_v47  ;;  %v1414_v43 = vsel %vm1397_vm6, %v1413_v0, %v1412_v52  ;;  %v2189_v31 = vpack.c.bf16 %v1691_v27, %v1690_v25  ;;  %v1692_v47 = vld [vmem:[#allocation10 + $0x10] sm:$0xff]  ;;  %v1697_v0 = vld [vmem:[#allocation10 + $0x38] sm:$0xff] }
 0x1dd   :  { %v2422_v44 = vmov 0.0|0.0   ;;  %v2195_v63 = vpack.c.bf16 %v1695_v56, %v1694_v40  ;;  %v1696_v52 = vld [vmem:[#allocation10 + $0x30] sm:$0xff] }
 0x1de   :  { %v2804_v42 = vadd.f32 %v2659_v58, %v1316_v55  ;;  %v1363_v11 = vmax.f32 %v2795_v29, 0.0  ;;  %2188 = vmatprep.subr.bf16.mxu1 %v2422_v44  ;;  %v2192_v55 = vpack.c.bf16 %v1693_v48, %v1692_v47 }
 0x1df   :  { %2190 = vmatpush3.bf16.msra.mxu1 %v2189_v31 }
 0x1e0   :  { %v1362_v33 = vmax.f32 %v2804_v42, 0.0  ;;  %v1417_v58 = vrot.slane %v1363_v11, 1  ;;  %2191 = vmatprep.subr.bf16.mxu1 %v2422_v44 }
 0x1e2   :  { %v1415_v32 = vrot.slane %v1362_v33, 2 }
 0x1e3   :  { %2193 = vmatpush3.bf16.msra.mxu1 %v2192_v55 }
 0x1e4   :  { %v1416_v1 = vsel %vm1400_vm7, %v1415_v32, %v1414_v43  ;;  %2194 = vmatprep.subr.bf16.mxu1 %v2422_v44  ;;  %v2198_v32 = vpack.c.bf16 %v1697_v0, %v1696_v52  ;;  %v1698_v43 = vld [vmem:[#allocation10 + $0x40] sm:$0xff] }
 0x1e5   :  { %v1418_v35 = vsel %vm1403_vm8, %v1417_v58, %v1416_v1  ;;  %v1699_v58 = vld [vmem:[#allocation10 + $0x48] sm:$0xff] }
 0x1e6   :  { %1530 = vmatmul.mubr.f32.gmra.mrb[34].mxu1 %v1418_v35  ;;  %v2201_v1 = vpack.c.bf16 %v1699_v58, %v1698_v43  ;;  %v1700_v35 = vld [vmem:[#allocation10 + $0x50] sm:$0xff] }
 0x1e7   :  { %2153 = vmatprep.mubr.msk.f32.mxu1 %vm2423_vm9, %v2424_v49  ;;  %2196 = vmatpush3.bf16.msra.mxu1 %v2195_v63 }
 0x1e8   :  { %2197 = vmatprep.subr.bf16.mxu1 %v2422_v44 }
 0x1eb   :  { %2199 = vmatpush3.bf16.msra.mxu1 %v2198_v32 }
 0x1ec   :  { %2200 = vmatprep.subr.bf16.mxu1 %v2422_v44 }
 0x1ef   :  { %2202 = vmatpush3.bf16.msra.mxu1 %v2201_v1 }
 0x1f0   :  { %2203 = vmatprep.subr.bf16.mxu1 %v2422_v44 }
 0x29d   :  { %v1954_v13 = vpop.f32.mrb[32].mxu1 }
 0x29e   :  { %v1955_v2 = vpop.f32.mrb[33].mxu1 }
 0x29f   :  { %v1956_v18 = vadd.f32 %v1955_v2, %v1954_v13  ;;  %v1701_v13 = vld [vmem:[#allocation10 + $0x58] sm:$0xff] }
 0x2a0   :  { %v2204_v2 = vpack.c.bf16 %v1701_v13, %v1700_v35 }
 0x2a1   :  { %v1527_v22 = vadd.f32 %v1956_v18, %v1847_v20  ;;  %v1702_v18 = vld [vmem:[#allocation10 + $0x60] sm:$0xff] }
 0x2a2   :  { %2205 = vmatpush3.bf16.msra.mxu1 %v2204_v2 }
 0x2a3   :  { %v1535_v60 = vmax.f32 %v1527_v22, 0.0  ;;  %2206 = vmatprep.subr.bf16.mxu1 %v2422_v44 }
 0x2a5   :  { %v1544_v16 = vmul.f32 %v1848_v23, %v1535_v60 }
 0x2b9   :  { %v1957_v36 = vpop.f32.mrb[34].mxu1 }
 0x2ba   :  { %v1958_v21 = vpop.f32.mrb[35].mxu1 }
 0x2bb   :  { %v1959_v5 = vadd.f32 %v1958_v21, %v1957_v36  ;;  %v1703_v36 = vld [vmem:[#allocation10 + $0x68] sm:$0xff]  ;;  %v1704_v21 = vld [vmem:[#allocation10 + $0x70] sm:$0xff] }
 0x2bd   :  { %v1532_v41 = vadd.f32 %v1959_v5, %v1847_v20  ;;  %v2207_v20 = vpack.c.bf16 %v1703_v36, %v1702_v18  ;;  %v1705_v5 = vld [vmem:[#allocation10 + $0x78] sm:$0xff] }
 0x2be   :  { %v2210_v22 = vpack.c.bf16 %v1705_v5, %v1704_v21 }
 0x2bf   :  { %v1536_v38 = vmax.f32 %v1532_v41, 0.0  ;;  %2208 = vmatpush3.bf16.msra.mxu1 %v2207_v20 }
 0x2c0   :  { %2209 = vmatprep.subr.bf16.mxu1 %v2422_v44 }
 0x2c1   :  { %v1545_v24 = vmul.f32 %v1848_v23, %v1536_v38 }
 0x2c3   :  { %1548 = vadd.xlane.f32.xlu0 %v1545_v24  ;;  %2211 = vmatpush3.bf16.msra.mxu1 %v2210_v22 }
 0x2c7   :  { %1546 = vadd.xlane.f32.xlu0 %v1544_v16 }
 0x350   :  { %v1549_v41 = vpop.xlane.xlu0 %1548 }
 0x351   :  { %v1556_v38 = vrot.slane %v1549_v41, 4 }
 0x353   :  { %v1557_v23 = vmax.f32 %v1549_v41, %v1556_v38 }
 0x354   :  { %v1547_v60 = vpop.xlane.xlu0 %1546 }
 0x355   :  { %v1558_v24 = vrot.slane %v1557_v23, 2  ;;  %v1550_v16 = vrot.slane %v1547_v60, 4 }
 0x357   :  { %v1559_v25 = vmax.f32 %v1557_v23, %v1558_v24  ;;  %v1551_v27 = vmax.f32 %v1547_v60, %v1550_v16 }
 0x359   :  { %v1560_v31 = vrot.slane %v1559_v25, 1  ;;  %v1552_v47 = vrot.slane %v1551_v27, 2 }
 0x35b   :  { %v1561_v48 = vmax.f32 %v1559_v25, %v1560_v31  ;;  %v1553_v55 = vmax.f32 %v1551_v27, %v1552_v47 }
 0x35d   :  { %v1563_v49 = vsub.f32 %v1549_v41, %v1561_v48  ;;  %v1554_v40 = vrot.slane %v1553_v55, 1 }
 0x35f   :  { %v1566_v56 = vmul.f32 1.442695, %v1563_v49  ;;  %v1555_v63 = vmax.f32 %v1553_v55, %v1554_v40 }
 0x361   :  { %2265 = vpow2.f32 %v1566_v56  ;;  %v1562_v52 = vsub.f32 %v1547_v60, %v1555_v63 }
 0x363   :  { %v1564_v44 = vmul.f32 1.442695, %v1562_v52 }
 0x365   :  { %2267 = vpow2.f32 %v1564_v44 }
 0x36b   :  { %v2266_v0 = vpop.eup %2265 }
 0x36c   :  { %v1574_v32 = vrot.slane %v2266_v0, 4 }
 0x36e   :  { %v1575_v43 = vadd.f32 %v2266_v0, %v1574_v32 }
 0x36f   :  { %v2268_v58 = vpop.eup %2267 }
 0x370   :  { %v1576_v1 = vrot.slane %v1575_v43, 2  ;;  %v1568_v35 = vrot.slane %v2268_v58, 4 }
 0x372   :  { %v1577_v13 = vadd.f32 %v1576_v1, %v1575_v43  ;;  %v1569_v2 = vadd.f32 %v2268_v58, %v1568_v35 }
 0x374   :  { %v1578_v18 = vrot.slane %v1577_v13, 1  ;;  %v1570_v36 = vrot.slane %v1569_v2, 2 }
 0x376   :  { %v1579_v20 = vadd.f32 %v1578_v18, %v1577_v13  ;;  %v1571_v21 = vadd.f32 %v1570_v36, %v1569_v2 }
 0x378   :  { %2269 = vrcp.f32 %v1579_v20  ;;  %v1572_v5 = vrot.slane %v1571_v21, 1 }
 0x37a   :  { %v1573_v22 = vadd.f32 %v1572_v5, %v1571_v21 }
 0x37c   :  { %2271 = vrcp.f32 %v1573_v22 }
 0x382   :  { %v2270_v41 = vpop.eup %2269 }
 0x383   :  { %v1583_v38 = vmul.f32 %v2270_v41, %v2266_v0 }
 0x385   :  { %v1593_v23 = vrot.slane %v1583_v38, 1  ;;  %v1594_v24 = vrot.slane %v1583_v38, 2  ;;  %v1595_v25 = vrot.slane %v1583_v38, 3  ;;  %v1596_v27 = vrot.slane %v1583_v38, 4 }
 0x386   :  { %v2272_v60 = vpop.eup %2271  ;;  %v1597_v31 = vrot.slane %v1583_v38, 5  ;;  %v1598_v47 = vrot.slane %v1583_v38, 6  ;;  %v1599_v48 = vrot.slane %v1583_v38, 7  ;;  %v1624_v0 = vmul.f32 %v1583_v38, %v1356_v57 }
 0x387   :  { %v1581_v16 = vmul.f32 %v2272_v60, %v2268_v58  ;;  %v1625_v55 = vmul.f32 %v1593_v23, %v1357_v4  ;;  %v1626_v32 = vmul.f32 %v1594_v24, %v1358_v19  ;;  %v1627_v15 = vmul.f32 %v1595_v25, %v1359_v37 }
 0x388   :  { %v1628_v7 = vmul.f32 %v1596_v27, %v1360_v26  ;;  %v1629_v28 = vmul.f32 %v1597_v31, %v1361_v50  ;;  %v1631_v9 = vmul.f32 %v1599_v48, %v1363_v11 }
 0x389   :  { %v1586_v49 = vrot.slane %v1581_v16, 1  ;;  %v1587_v40 = vrot.slane %v1581_v16, 2  ;;  %v1588_v56 = vrot.slane %v1581_v16, 3  ;;  %v1589_v63 = vrot.slane %v1581_v16, 4 }
 0x38a   :  { %v1590_v52 = vrot.slane %v1581_v16, 5  ;;  %v1591_v44 = vrot.slane %v1581_v16, 6  ;;  %v1592_v43 = vrot.slane %v1581_v16, 7  ;;  %v1662_v19 = vrot.slane %v1625_v55, 7 }
 0x38b   :  { %v1617_v58 = vmul.f32 %v1586_v49, %v1349_v6  ;;  %v1618_v3 = vmul.f32 %v1587_v40, %v1350_v30  ;;  %v1619_v4 = vmul.f32 %v1588_v56, %v1351_v45  ;;  %v1620_v1 = vmul.f32 %v1589_v63, %v1352_v62  ;;  %v1849_v49 = vld [vmem:[%s2895_s8] ss:$0 sm:$0xff] }
 0x38c   :  { %v1616_v39 = vmul.f32 %v1581_v16, %v1348_v12  ;;  %v1621_v6 = vmul.f32 %v1590_v52, %v1353_v14  ;;  %v1622_v8 = vmul.f32 %v1591_v44, %v1354_v46  ;;  %v1630_v45 = vmul.f32 %v1598_v47, %v1362_v33 }
 0x38d   :  { %v1648_v34 = vrot.slane %v1617_v58, 7  ;;  %v1650_v30 = vrot.slane %v1618_v3, 6  ;;  %v1663_v62 = vsel %vm1385_vm2, %v1662_v19, %v1624_v0  ;;  %v1623_v53 = vmul.f32 %v1592_v43, %v1355_v59 }
 0x38e   :  { %v1652_v54 = vrot.slane %v1619_v4, 5  ;;  %v1664_v14 = vrot.slane %v1626_v32, 6  ;;  %v1654_v46 = vrot.slane %v1620_v1, 4  ;;  %v1666_v17 = vrot.slane %v1627_v15, 5 }
 0x38f   :  { %v1649_v12 = vsel %vm1385_vm2, %v1648_v34, %v1616_v39  ;;  %v1656_v26 = vrot.slane %v1621_v6, 3  ;;  %v1668_v51 = vrot.slane %v1628_v7, 4  ;;  %v1658_v59 = vrot.slane %v1622_v8, 2 }
 0x390   :  { %v1651_v10 = vsel %vm1388_vm3, %v1650_v30, %v1649_v12  ;;  %v1665_v37 = vsel %vm1388_vm3, %v1664_v14, %v1663_v62  ;;  %v1670_v42 = vrot.slane %v1629_v28, 3  ;;  %v1660_v29 = vrot.slane %v1623_v53, 1 }
 0x391   :  { %v1653_v57 = vsel %vm1391_vm4, %v1652_v54, %v1651_v10  ;;  %v1667_v50 = vsel %vm1391_vm4, %v1666_v17, %v1665_v37  ;;  %v1672_v35 = vrot.slane %v1630_v45, 2  ;;  %v1674_v18 = vrot.slane %v1631_v9, 1 }
 0x392   :  { %v1655_v61 = vsel %vm1394_vm5, %v1654_v46, %v1653_v57  ;;  %v1669_v11 = vsel %vm1394_vm5, %v1668_v51, %v1667_v50 }
 0x393   :  { %v1657_v33 = vsel %vm1397_vm6, %v1656_v26, %v1655_v61  ;;  %v1671_v2 = vsel %vm1397_vm6, %v1670_v42, %v1669_v11 }
 0x394   :  { %v1659_v13 = vsel %vm1400_vm7, %v1658_v59, %v1657_v33  ;;  %v1673_v20 = vsel %vm1400_vm7, %v1672_v35, %v1671_v2 }
 0x395   :  { %v1661_v36 = vsel %vm1403_vm8, %v1660_v29, %v1659_v13  ;;  %v1675_v21 = vsel %vm1403_vm8, %v1674_v18, %v1673_v20 }
 0x396   :  { %v1678_v5 = vrot.slane %v1661_v36, 4  ;;  %v1684_v22 = vrot.slane %v1675_v21, 4 }
 0x398   :  { %v1679_v41 = vadd.f32 %v1678_v5, %v1661_v36  ;;  %v1685_v38 = vadd.f32 %v1684_v22, %v1675_v21 }
 0x39a   :  { %v1680_v23 = vrot.slane %v1679_v41, 2  ;;  %v1686_v60 = vrot.slane %v1685_v38, 2 }
 0x39c   :  { %v1681_v24 = vadd.f32 %v1680_v23, %v1679_v41  ;;  %v1687_v16 = vadd.f32 %v1686_v60, %v1685_v38 }
 0x39e   :  { %v1682_v25 = vrot.slane %v1681_v24, 1  ;;  %v1688_v27 = vrot.slane %v1687_v16, 1 }
 0x3a0   :  { %v1683_v31 = vadd.f32 %v1682_v25, %v1681_v24  ;;  %v1689_v47 = vadd.f32 %v1688_v27, %v1687_v16 }
 0x3a2   :  { %v1715_v48 = vrot.slane %v1689_v47, 7 }
 0x3a4   :  { %v1716_v55 = vsel %vm1385_vm2, %v1715_v48, %v1683_v31 }
 0x3a5   :  { %2154 = vmatmul.mubr.f32.vlgmr.msra.gmra.mrb[36].mxu1 %v1716_v55 }
 0x478   :  { %v1784_v40 = vpop.f32.mrb[36].mxu1 }
 0x479   :  { %v1785_v56 = vadd.f32 %v1849_v49, %v1784_v40  ;;  %v2155_v63 = vpop.f32.mrb[37].mxu1 }
 0x47b   :  { %1788 = vst [vmem:[#allocation11] sm:$0x3] %v1785_v56 }
 0x47c   :  { %2394 = shalt.err (!%p2391_p2)
}
 0x47d   :  { %s2395_s15 = scalar_lea.hbm %s2896_s9, 32 }
 0x47e   :  { %p2396_p3 = scmp.ne.s32.totalorder %s2896_s9, %s2395_s15  ;;  %p2399_p4 = scmp.lt.u32.totalorder %s2395_s15, %s2896_s9 }
 0x480   :  { %p2401_p5 = pnand %p2399_p4, %p2396_p3 }
 0x482   :  { %2404 = shalt.err (!%p2401_p5)
}
 0x483   :  { %1798 = dma.vmem_to_hbm [thread:$0]  %s1796_s13, 32, %s2896_s9, [#allocation4]  }
 0x484   :  { %2411 = dma.done.wait [#allocation4], 32  }
 0x485   :  { %2412 = vsyncadd [#allocation4], 4294967264 }
 0x486   :  { %1802 = vsyncpa [#allocation3], 1 }
 0x487   :  { %1803 = vsyncpa [#allocation6], 1 }
 0x488   :  { %1804 = vsyncpa [#allocation9], 1 }
 0x489   :  { %1805 = vsyncpa [#allocation4], 1 }

</bundles_post_ra>
